<compile_context>
chip_gen: v5e
topology: v5e:2x2
jax: 0.10.0
libtpu: 0.0.40
codegen_flags: <defaults>
</compile_context>

<pallas_src>
import math
import jax
import jax.numpy as jnp
from jax import lax
from jax.experimental import pallas as pl
from jax.experimental.pallas import tpu as pltpu


# ----------------------------------------------------------------------------- #
# helpers
# ----------------------------------------------------------------------------- #
def _round_up(n, m):
    return ((n + m - 1) // m) * m


def _pick_tile(dim, targets):
    """Largest target that evenly divides dim, else the full dim (valid block)."""
    for t in targets:
        if dim % t == 0:
            return t
    return dim


_ROW_TILES = (512, 256, 128, 64, 32, 16, 8)
_LANE_TILES = (512, 256, 128)
_GELU_C = 0.7978845608028654  # sqrt(2/pi)


def _apply_act(y, activation):
    if activation == "gelu":
        # TODO(synk): exact erf-GELU replaced with the standard tanh approximation.
        return 0.5 * y * (1.0 + jnp.tanh(_GELU_C * (y + 0.044715 * y * y * y)))
    if activation == "tanh":
        return jnp.tanh(y)
    return y


# ----------------------------------------------------------------------------- #
# dense (tiled, optional K-accumulator, fused bias + activation)
# ----------------------------------------------------------------------------- #
def _make_dense_kernel_multi_k(activation):
    def kernel(x_ref, w_ref, b_ref, o_ref, acc_ref):
        @pl.when(pl.program_id(2) == 0)
        def _init():
            acc_ref[...] = jnp.zeros_like(acc_ref)

        acc_ref[...] += jnp.dot(
            x_ref[...].astype(jnp.bfloat16),
            w_ref[...].astype(jnp.bfloat16),
            preferred_element_type=jnp.float32)

        @pl.when(pl.program_id(2) == pl.num_programs(2) - 1)
        def _finalize():
            y = _apply_act(acc_ref[...] + b_ref[...], activation)
            o_ref[...] = y.astype(o_ref.dtype)

    return kernel


def _make_dense_kernel_single_k(activation):
    def kernel(x_ref, w_ref, b_ref, o_ref):
        y = jnp.dot(
            x_ref[...].astype(jnp.bfloat16),
            w_ref[...].astype(jnp.bfloat16),
            preferred_element_type=jnp.float32) + b_ref[...]
        o_ref[...] = _apply_act(y, activation).astype(o_ref.dtype)

    return kernel


def pallas_dense(x, w, b, activation="none"):
    """y = activation(x @ w + b); x:(M,K) f32, w:(K,N) f32, b:(N,) f32.

    Operands are cast to bf16 inside the kernel (f32 accumulation).  N is padded
    to a multiple of 128 for lane-dense output stores; result is sliced back.
    """
    M, K = x.shape
    N = w.shape[1]
    Np = _round_up(N, 128)
    if Np != N:
        w = jnp.pad(w, ((0, 0), (0, Np - N)))
        b = jnp.pad(b, ((0, Np - N),))

    tm = _pick_tile(M, _ROW_TILES)
    tk = _pick_tile(K, _LANE_TILES)
    tn = _pick_tile(Np, _LANE_TILES)
    kt = K // tk

    cost = pl.CostEstimate(
        flops=2 * M * Np * K,
        transcendentals=(M * Np) if activation in ("gelu", "tanh") else 0,
        bytes_accessed=4 * (M * K + K * Np + Np + M * Np))

    if kt == 1:
        # Whole K reduction in one tile: scratch-free kernel, 2-D grid.
        out = pl.pallas_call(
            _make_dense_kernel_single_k(activation),
            out_shape=jax.ShapeDtypeStruct((M, Np), jnp.float32),
            grid=(M // tm, Np // tn),
            in_specs=[
                pl.BlockSpec((tm, K), lambda i, j: (i, 0)),
                pl.BlockSpec((K, tn), lambda i, j: (0, j)),
                pl.BlockSpec((1, tn), lambda i, j: (0, j)),
            ],
            out_specs=pl.BlockSpec((tm, tn), lambda i, j: (i, j)),
            compiler_params=pltpu.CompilerParams(
                dimension_semantics=("parallel", "parallel")),
            cost_estimate=cost,
        )(x, w, b.reshape(1, Np))
    else:
        out = pl.pallas_call(
            _make_dense_kernel_multi_k(activation),
            out_shape=jax.ShapeDtypeStruct((M, Np), jnp.float32),
            grid=(M // tm, Np // tn, kt),
            in_specs=[
                pl.BlockSpec((tm, tk), lambda i, j, k: (i, k)),
                pl.BlockSpec((tk, tn), lambda i, j, k: (k, j)),
                pl.BlockSpec((1, tn), lambda i, j, k: (0, j)),
            ],
            out_specs=pl.BlockSpec((tm, tn), lambda i, j, k: (i, j)),
            scratch_shapes=[pltpu.VMEM((tm, tn), jnp.float32)],
            compiler_params=pltpu.CompilerParams(
                dimension_semantics=("parallel", "parallel", "arbitrary")),
            cost_estimate=cost,
        )(x, w, b.reshape(1, Np))
    return out if Np == N else out[:, :N]


# ----------------------------------------------------------------------------- #
# LayerNorm (row-tiled, residual add fused)
# ----------------------------------------------------------------------------- #
def _ln_kernel(x_ref, g_ref, b_ref, o_ref):
    x = x_ref[...]
    mu = jnp.mean(x, axis=-1, keepdims=True)
    var = jnp.mean((x - mu) ** 2, axis=-1, keepdims=True)
    o_ref[...] = (x - mu) * lax.rsqrt(var + 1e-12) * g_ref[...] + b_ref[...]


def _ln_res_kernel(x_ref, r_ref, g_ref, b_ref, o_ref):
    x = x_ref[...] + r_ref[...]            # residual add fused into the kernel
    mu = jnp.mean(x, axis=-1, keepdims=True)
    var = jnp.mean((x - mu) ** 2, axis=-1, keepdims=True)
    o_ref[...] = (x - mu) * lax.rsqrt(var + 1e-12) * g_ref[...] + b_ref[...]


def pallas_layernorm(x, gamma, beta, residual=None):
    M, H = x.shape
    tm = _pick_tile(M, _ROW_TILES)
    grid = (M // tm,)
    row_spec = pl.BlockSpec((tm, H), lambda i: (i, 0))
    vec_spec = pl.BlockSpec((1, H), lambda i: (0, 0))
    cparams = pltpu.CompilerParams(dimension_semantics=("parallel",))
    gamma = gamma.reshape(1, H)
    beta = beta.reshape(1, H)
    if residual is None:
        return pl.pallas_call(
            _ln_kernel,
            out_shape=jax.ShapeDtypeStruct((M, H), jnp.float32),
            grid=grid,
            in_specs=[row_spec, vec_spec, vec_spec],
            out_specs=row_spec,
            compiler_params=cparams,
        )(x, gamma, beta)
    return pl.pallas_call(
        _ln_res_kernel,
        out_shape=jax.ShapeDtypeStruct((M, H), jnp.float32),
        grid=grid,
        in_specs=[row_spec, row_spec, vec_spec, vec_spec],
        out_specs=row_spec,
        compiler_params=cparams,
    )(x, residual, gamma, beta)


# ----------------------------------------------------------------------------- #
# fused multi-head attention: grid over batch, all heads per step, no transposes
# ----------------------------------------------------------------------------- #
def pallas_attention(qkv, ext_mask, num_heads):
    """qkv: (B, T, 3H) fused Q|K|V projections, ext_mask: (B, 1, T) additive mask.
    Returns context (B, T, H) in the natural (batch, seq, hidden) layout."""
    B, T, H3 = qkv.shape
    H = H3 // 3
    Dh = H // num_heads
    scale = 1.0 / math.sqrt(Dh)

    def kernel(qkv_ref, m_ref, o_ref):
        slab = qkv_ref[0]                  # (T, 3H) f32
        mask = m_ref[0]                    # (1, T)  f32
        q = slab[:, :H]
        k = slab[:, H:2 * H]
        v = slab[:, 2 * H:]
        ctx = []
        for h in range(num_heads):         # static unroll over heads
            sl = slice(h * Dh, (h + 1) * Dh)
            qh = q[:, sl].astype(jnp.bfloat16)
            kh = k[:, sl].astype(jnp.bfloat16)
            vh = v[:, sl].astype(jnp.bfloat16)
            s = lax.dot_general(qh, kh, (((1,), (1,)), ((), ())),
                                preferred_element_type=jnp.float32) * scale
            s = s + mask
            s = s - jnp.max(s, axis=-1, keepdims=True)
            p = jnp.exp(s)
            p = p * pl.reciprocal(jnp.sum(p, axis=-1, keepdims=True), approx=True)
            ctx.append(jnp.dot(p.astype(jnp.bfloat16), vh,
                               preferred_element_type=jnp.float32))
        o_ref[0] = jnp.concatenate(ctx, axis=-1)   # single lane-dense store

    return pl.pallas_call(
        kernel,
        out_shape=jax.ShapeDtypeStruct((B, T, H), jnp.float32),
        grid=(B,),
        in_specs=[
            pl.BlockSpec((1, T, H3), lambda b: (b, 0, 0)),
            pl.BlockSpec((1, 1, T), lambda b: (b, 0, 0)),
        ],
        out_specs=pl.BlockSpec((1, T, H), lambda b: (b, 0, 0)),
        compiler_params=pltpu.CompilerParams(dimension_semantics=("parallel",)),
        cost_estimate=pl.CostEstimate(
            flops=4 * B * T * T * H,
            transcendentals=B * num_heads * T * T,
            bytes_accessed=4 * (B * T * H3 + B * T + B * T * H)),
    )(qkv, ext_mask)


# ----------------------------------------------------------------------------- #
# Cross entropy (mean NLL, == torch.nn.CrossEntropyLoss default)
# ----------------------------------------------------------------------------- #
def pallas_cross_entropy(logits, onehot):
    B, C = logits.shape

    def kernel(lg_ref, oh_ref, o_ref):
        lg = lg_ref[...]
        m = jnp.max(lg, axis=-1, keepdims=True)
        lse = jnp.log(jnp.sum(jnp.exp(lg - m), axis=-1, keepdims=True)) + m
        nll = -jnp.sum(oh_ref[...] * (lg - lse), axis=-1, keepdims=True)   # (B,1)
        o_ref[...] = jnp.mean(nll, axis=0, keepdims=True)                  # (1,1)

    out = pl.pallas_call(
        kernel,
        out_shape=jax.ShapeDtypeStruct((1, 1), jnp.float32),
        grid=(1,),
        in_specs=[
            pl.BlockSpec((B, C), lambda i: (0, 0)),
            pl.BlockSpec((B, C), lambda i: (0, 0)),
        ],
        out_specs=pl.BlockSpec((1, 1), lambda i: (0, 0)),
    )(logits, onehot)
    return out[0, 0]


# ----------------------------------------------------------------------------- #
# CRF (torchcrf semantics), plain JAX — sequential DP with data-dependent
# backtracking has no clean Pallas equivalent at these tiny sizes.
# TODO(synk): CRF forward/Viterbi kept in plain JAX (lax.scan / fori_loop).
# ----------------------------------------------------------------------------- #
def crf_log_likelihood(emissions, tags, mask, start, end, trans):
    B, T, K = emissions.shape
    maskf = mask.astype(jnp.float32)

    first_tags = tags[:, 0]
    score = start[first_tags] + jnp.take_along_axis(
        emissions[:, 0], first_tags[:, None], axis=1)[:, 0]

    def num_step(i, sc):
        prev = tags[:, i - 1]
        cur = tags[:, i]
        step = trans[prev, cur] + jnp.take_along_axis(
            emissions[:, i], cur[:, None], axis=1)[:, 0]
        return sc + step * maskf[:, i]

    score = lax.fori_loop(1, T, num_step, score)
    seq_len = jnp.sum(maskf, axis=1).astype(jnp.int32)
    last_tags = jnp.take_along_axis(tags, (seq_len - 1)[:, None], axis=1)[:, 0]
    score = score + end[last_tags]

    alpha = start[None, :] + emissions[:, 0]

    def den_step(i, a):
        b = a[:, :, None] + trans[None, :, :] + emissions[:, i][:, None, :]
        nxt = jax.scipy.special.logsumexp(b, axis=1)
        return jnp.where(maskf[:, i][:, None] > 0, nxt, a)

    alpha = lax.fori_loop(1, T, den_step, alpha)
    log_z = jax.scipy.special.logsumexp(alpha + end[None, :], axis=1)
    return score - log_z  # (B,) log-likelihoods (reduction='none')


def crf_viterbi_decode(emissions, mask, start, end, trans):
    B, T, K = emissions.shape
    maskf = mask.astype(jnp.float32)
    seq_len = jnp.sum(maskf, axis=1).astype(jnp.int32)

    score0 = start[None, :] + emissions[:, 0]

    def fwd_step(score, t):
        b = score[:, :, None] + trans[None, :, :] + emissions[:, t][:, None, :]
        nxt = jnp.max(b, axis=1)
        idx = jnp.argmax(b, axis=1).astype(jnp.int32)
        keep = maskf[:, t][:, None] > 0
        return jnp.where(keep, nxt, score), idx

    score, history = lax.scan(fwd_step, score0, jnp.arange(1, T))  # (T-1,B,K)
    score = score + end[None, :]
    best_last = jnp.argmax(score, axis=1).astype(jnp.int32)

    def back_step(tag_next, t):
        hist_t = history[jnp.minimum(t, T - 2)]                      # (B,K)
        from_hist = jnp.take_along_axis(hist_t, tag_next[:, None], axis=1)[:, 0]
        tag_t = jnp.where(t == seq_len - 1, best_last, from_hist)
        tag_t = jnp.where(t < seq_len, tag_t, 0)
        return tag_t, tag_t

    _, tags_rev = lax.scan(back_step, best_last, jnp.arange(T - 1, -1, -1))
    best_paths = jnp.flip(tags_rev.T, axis=1)   # (B, T), zero-padded beyond seq_len
    return best_paths, seq_len


# ----------------------------------------------------------------------------- #
# BERT + heads forward
# ----------------------------------------------------------------------------- #
def bert_forward(bp, input_ids, token_type_ids, attention_mask, num_heads):
    B, T = input_ids.shape
    H = bp["word_emb"].shape[1]

    pos_ids = jnp.arange(T, dtype=jnp.int32)[None, :]
    emb = (bp["word_emb"][input_ids]
           + bp["pos_emb"][pos_ids]
           + bp["type_emb"][token_type_ids])                       # (B,T,H)
    x2 = pallas_layernorm(emb.reshape(B * T, H), bp["emb_ln_g"], bp["emb_ln_b"])

    ext_mask = ((1.0 - attention_mask.astype(jnp.float32)) * -10000.0)[:, None, :]  # (B,1,T)

    for lp in bp["layers"]:
        qkv = pallas_dense(x2, lp["qkv_w"], lp["qkv_b"])            # fused QKV (B*T, 3H)
        ctx = pallas_attention(qkv.reshape(B, T, 3 * H), ext_mask, num_heads)   # (B,T,H)
        attn_out = pallas_dense(ctx.reshape(B * T, H), lp["ao_w"], lp["ao_b"])
        x2 = pallas_layernorm(attn_out, lp["ln1_g"], lp["ln1_b"], residual=x2)
        inter = pallas_dense(x2, lp["i_w"], lp["i_b"], activation="gelu")
        ffn = pallas_dense(inter, lp["o_w"], lp["o_b"])
        x2 = pallas_layernorm(ffn, lp["ln2_g"], lp["ln2_b"], residual=x2)

    seq_out = x2.reshape(B, T, H)
    pooled = pallas_dense(seq_out[:, 0, :], bp["pool_w"], bp["pool_b"], activation="tanh")
    return seq_out, pooled


def model_forward(params, input_ids, token_type_ids, attention_mask,
                  labels, ner_labels, ner_mask, *, num_heads, num_labels, num_ner_labels):
    seq_out, pooled = bert_forward(params["bert"], input_ids, token_type_ids,
                                   attention_mask, num_heads)
    # dropout == identity (deterministic / eval mode)
    B, T, H = seq_out.shape

    logits = pallas_dense(pooled, params["cls_w"], params["cls_b"])            # (B, num_labels)
    ner_logits = pallas_dense(seq_out.reshape(B * T, H),
                              params["ner_w"], params["ner_b"]).reshape(B, T, num_ner_labels)

    ner_predict, pred_lens = crf_viterbi_decode(
        ner_logits, ner_mask, params["crf_start"], params["crf_end"], params["crf_trans"])

    onehot = jax.nn.one_hot(labels, num_labels, dtype=jnp.float32)
    loss = pallas_cross_entropy(logits, onehot)

    llh = crf_log_likelihood(ner_logits, ner_labels, ner_mask,
                             params["crf_start"], params["crf_end"], params["crf_trans"])
    ner_loss = jnp.mean(-llh)

    return loss, ner_loss, logits, ner_predict, pred_lens


# ----------------------------------------------------------------------------- #
# Deterministic parameter init (shapes implied by the module's __init__;
# Q/K/V weights are created pre-fused as (H, 3H) — equivalent to concatenating
# the three separately-initialized nn.Linear weights).
# ----------------------------------------------------------------------------- #
def init_params(key, vocab, maxpos, ntype, H, I, L, num_labels, num_ner, std=0.02):
    keys = jax.random.split(key, 64)
    ki = iter(keys)

    def nrm(shape):
        return std * jax.random.normal(next(ki), shape, jnp.float32)

    bert = dict(
        word_emb=nrm((vocab, H)),
        pos_emb=nrm((maxpos, H)),
        type_emb=nrm((ntype, H)),
        emb_ln_g=nrm((H,)), emb_ln_b=nrm((H,)),
        pool_w=nrm((H, H)), pool_b=jnp.zeros((H,), jnp.float32),
        layers=[],
    )
    for _ in range(L):
        bert["layers"].append(dict(
            qkv_w=nrm((H, 3 * H)), qkv_b=jnp.zeros((3 * H,), jnp.float32),
            ao_w=nrm((H, H)), ao_b=jnp.zeros((H,), jnp.float32),
            ln1_g=nrm((H,)), ln1_b=nrm((H,)),
            i_w=nrm((H, I)), i_b=jnp.zeros((I,), jnp.float32),
            o_w=nrm((I, H)), o_b=jnp.zeros((H,), jnp.float32),
            ln2_g=nrm((H,)), ln2_b=nrm((H,)),
        ))

    params = dict(
        bert=bert,
        cls_w=nrm((H, num_labels)), cls_b=jnp.zeros((num_labels,), jnp.float32),
        ner_w=nrm((H, num_ner)), ner_b=jnp.zeros((num_ner,), jnp.float32),
        crf_start=jax.random.uniform(next(ki), (num_ner,), jnp.float32, -0.1, 0.1),
        crf_end=jax.random.uniform(next(ki), (num_ner,), jnp.float32, -0.1, 0.1),
        crf_trans=jax.random.uniform(next(ki), (num_ner, num_ner), jnp.float32, -0.1, 0.1),
    )
    return params


# ----------------------------------------------------------------------------- #
if __name__ == "__main__":
    B, T = 2, 8
    H, NUM_HEADS, INTER, LAYERS = 32, 2, 64, 2
    VOCAB, MAXPOS, NTYPE = 50, 16, 2
    NUM_LABELS, NUM_NER = 3, 5

    key = jax.random.PRNGKey(0)
    k_param, k_ids, k_type, k_lab, k_ner = jax.random.split(key, 5)

    params = init_params(k_param, VOCAB, MAXPOS, NTYPE, H, INTER, LAYERS,
                         NUM_LABELS, NUM_NER)

    input_ids = jax.random.randint(k_ids, (B, T), 0, VOCAB, dtype=jnp.int32)
    token_type_ids = jax.random.randint(k_type, (B, T), 0, NTYPE, dtype=jnp.int32)
    attention_mask = jnp.ones((B, T), dtype=jnp.int32)
    labels = jax.random.randint(k_lab, (B,), 0, NUM_LABELS, dtype=jnp.int32)
    ner_labels = jax.random.randint(k_ner, (B, T), 0, NUM_NER, dtype=jnp.int32)
    ner_mask = jnp.array([[1] * 8, [1] * 5 + [0] * 3], dtype=jnp.int32)  # ragged lengths 8, 5

    fwd = jax.jit(lambda ids, tt, am, lb, nl, nm: model_forward(
        params, ids, tt, am, lb, nl, nm,
        num_heads=NUM_HEADS, num_labels=NUM_LABELS, num_ner_labels=NUM_NER))

    loss, ner_loss, logits, ner_predict, pred_lens = fwd(
        input_ids, token_type_ids, attention_mask, labels, ner_labels, ner_mask)
    jax.block_until_ready((loss, ner_loss, logits, ner_predict, pred_lens))

    print("KERNEL_OK")
</pallas_src>

<mosaic_0001>
module attributes {stable_mosaic.version = 11 : i64} {
  func.func @_ln_kernel(%arg0: i32, %arg1: memref<16x32xf32, #tpu.memory_space<vmem>>, %arg2: memref<1x32xf32, #tpu.memory_space<vmem>>, %arg3: memref<1x32xf32, #tpu.memory_space<vmem>>, %arg4: memref<16x32xf32, #tpu.memory_space<vmem>>) attributes {dimension_semantics = [#tpu.dimension_semantics<parallel>], iteration_bounds = array<i64: 1>, scalar_prefetch = 0 : i64, scratch_operands = 0 : i64, tpu.core_type = #tpu.core_type<tc>, window_params = [{transform_indices = @transform_0, window_bounds = array<i64: 16, 32>}, {pipeline_mode = #tpu.pipeline_mode<synchronous>, transform_indices = @transform_1, window_bounds = array<i64: 1, 32>}, {pipeline_mode = #tpu.pipeline_mode<synchronous>, transform_indices = @transform_2, window_bounds = array<i64: 1, 32>}, {transform_indices = @transform_3, window_bounds = array<i64: 16, 32>}]} {
    %c0 = arith.constant 0 : index
    %c0_0 = arith.constant 0 : index
    %0 = vector.load %arg1[%c0, %c0_0] : memref<16x32xf32, #tpu.memory_space<vmem>>, vector<16x32xf32>
    %cst = arith.constant dense<0.000000e+00> : vector<16xf32>
    %1 = vector.multi_reduction <add>, %0, %cst [1] : vector<16x32xf32> to vector<16xf32>
    %2 = vector.shape_cast %1 : vector<16xf32> to vector<16x1xf32>
    %cst_1 = arith.constant 3.200000e+01 : f32
    %3 = vector.broadcast %cst_1 : f32 to vector<16x1xf32>
    %4 = arith.divf %2, %3 : vector<16x1xf32>
    %5 = vector.broadcast %4 : vector<16x1xf32> to vector<16x32xf32>
    %6 = arith.subf %0, %5 : vector<16x32xf32>
    %7 = arith.mulf %6, %6 : vector<16x32xf32>
    %cst_2 = arith.constant dense<0.000000e+00> : vector<16xf32>
    %8 = vector.multi_reduction <add>, %7, %cst_2 [1] : vector<16x32xf32> to vector<16xf32>
    %9 = vector.shape_cast %8 : vector<16xf32> to vector<16x1xf32>
    %cst_3 = arith.constant 3.200000e+01 : f32
    %10 = vector.broadcast %cst_3 : f32 to vector<16x1xf32>
    %11 = arith.divf %9, %10 : vector<16x1xf32>
    %12 = vector.broadcast %4 : vector<16x1xf32> to vector<16x32xf32>
    %13 = arith.subf %0, %12 : vector<16x32xf32>
    %cst_4 = arith.constant 9.99999996E-13 : f32
    %14 = vector.broadcast %cst_4 : f32 to vector<16x1xf32>
    %15 = arith.addf %11, %14 : vector<16x1xf32>
    %16 = math.rsqrt %15 : vector<16x1xf32>
    %17 = vector.broadcast %16 : vector<16x1xf32> to vector<16x32xf32>
    %18 = arith.mulf %13, %17 : vector<16x32xf32>
    %c0_5 = arith.constant 0 : index
    %c0_6 = arith.constant 0 : index
    %19 = vector.load %arg2[%c0_5, %c0_6] : memref<1x32xf32, #tpu.memory_space<vmem>>, vector<1x32xf32>
    %20 = vector.broadcast %19 : vector<1x32xf32> to vector<16x32xf32>
    %21 = arith.mulf %18, %20 : vector<16x32xf32>
    %c0_7 = arith.constant 0 : index
    %c0_8 = arith.constant 0 : index
    %22 = vector.load %arg3[%c0_7, %c0_8] : memref<1x32xf32, #tpu.memory_space<vmem>>, vector<1x32xf32>
    %23 = vector.broadcast %22 : vector<1x32xf32> to vector<16x32xf32>
    %24 = arith.addf %21, %23 : vector<16x32xf32>
    %c0_9 = arith.constant 0 : index
    %c0_10 = arith.constant 0 : index
    %25 = vector.load %arg4[%c0_9, %c0_10] : memref<16x32xf32, #tpu.memory_space<vmem>>, vector<16x32xf32>
    tpu.vector_store %arg4[%c0_9, %c0_10], %24 {strides = array<i32>} : memref<16x32xf32, #tpu.memory_space<vmem>>, vector<16x32xf32>,
    return
  }
  func.func @transform_0(%arg0: i32) -> (i32, i32) {
    %c0_i32 = arith.constant 0 : i32
    %c0_i32_0 = arith.constant 0 : i32
    return %arg0, %c0_i32 : i32, i32
  }
  func.func @transform_1(%arg0: i32) -> (i32, i32) {
    %c0_i32 = arith.constant 0 : i32
    %c0_i32_0 = arith.constant 0 : i32
    %c0_i32_1 = arith.constant 0 : i32
    return %c0_i32, %c0_i32_0 : i32, i32
  }
  func.func @transform_2(%arg0: i32) -> (i32, i32) {
    %c0_i32 = arith.constant 0 : i32
    %c0_i32_0 = arith.constant 0 : i32
    %c0_i32_1 = arith.constant 0 : i32
    return %c0_i32, %c0_i32_0 : i32, i32
  }
  func.func @transform_3(%arg0: i32) -> (i32, i32) {
    %c0_i32 = arith.constant 0 : i32
    %c0_i32_0 = arith.constant 0 : i32
    return %arg0, %c0_i32 : i32, i32
  }
}

module attributes {stable_mosaic.version = 11 : i64} {
  func.func @kernel(%arg0: i32, %arg1: i32, %arg2: memref<16x32xf32, #tpu.memory_space<vmem>>, %arg3: memref<32x128xf32, #tpu.memory_space<vmem>>, %arg4: memref<1x128xf32, #tpu.memory_space<vmem>>, %arg5: memref<16x128xf32, #tpu.memory_space<vmem>>) attributes {dimension_semantics = [#tpu.dimension_semantics<parallel>, #tpu.dimension_semantics<parallel>], iteration_bounds = array<i64: 1, 1>, scalar_prefetch = 0 : i64, scratch_operands = 0 : i64, tpu.core_type = #tpu.core_type<tc>, window_params = [{transform_indices = @transform_0, window_bounds = array<i64: 16, 32>}, {transform_indices = @transform_1, window_bounds = array<i64: 32, 128>}, {transform_indices = @transform_2, window_bounds = array<i64: 1, 128>}, {transform_indices = @transform_3, window_bounds = array<i64: 16, 128>}]} {
    %c0 = arith.constant 0 : index
    %c0_0 = arith.constant 0 : index
    %0 = vector.load %arg2[%c0, %c0_0] : memref<16x32xf32, #tpu.memory_space<vmem>>, vector<16x32xf32>
    %1 = arith.truncf %0 : vector<16x32xf32> to vector<16x32xbf16>
    %c0_1 = arith.constant 0 : index
    %c0_2 = arith.constant 0 : index
    %2 = vector.load %arg3[%c0_1, %c0_2] : memref<32x128xf32, #tpu.memory_space<vmem>>, vector<32x128xf32>
    %3 = arith.truncf %2 : vector<32x128xf32> to vector<32x128xbf16>
    %cst = arith.constant dense<0.000000e+00> : vector<16x128xf32>
    %4 = tpu.matmul %1, %3, %cst {dimension_numbers = #tpu.dot_dimension_numbers<[1], [0], [0], [1], [0, 0, 1, 1], [], []>} : vector<16x32xbf16>, vector<32x128xbf16>, vector<16x128xf32> -> vector<16x128xf32>
    %c0_3 = arith.constant 0 : index
    %c0_4 = arith.constant 0 : index
    %5 = vector.load %arg4[%c0_3, %c0_4] : memref<1x128xf32, #tpu.memory_space<vmem>>, vector<1x128xf32>
    %6 = vector.broadcast %5 : vector<1x128xf32> to vector<16x128xf32>
    %7 = arith.addf %4, %6 : vector<16x128xf32>
    %c0_5 = arith.constant 0 : index
    %c0_6 = arith.constant 0 : index
    %8 = vector.load %arg5[%c0_5, %c0_6] : memref<16x128xf32, #tpu.memory_space<vmem>>, vector<16x128xf32>
    tpu.vector_store %arg5[%c0_5, %c0_6], %7 {strides = array<i32>} : memref<16x128xf32, #tpu.memory_space<vmem>>, vector<16x128xf32>,
    return
  }
  func.func @transform_0(%arg0: i32, %arg1: i32) -> (i32, i32) {
    %c0_i32 = arith.constant 0 : i32
    %c0_i32_0 = arith.constant 0 : i32
    return %arg0, %c0_i32 : i32, i32
  }
  func.func @transform_1(%arg0: i32, %arg1: i32) -> (i32, i32) {
    %c0_i32 = arith.constant 0 : i32
    %c0_i32_0 = arith.constant 0 : i32
    return %c0_i32, %arg1 : i32, i32
  }
  func.func @transform_2(%arg0: i32, %arg1: i32) -> (i32, i32) {
    %c0_i32 = arith.constant 0 : i32
    %c0_i32_0 = arith.constant 0 : i32
    return %c0_i32, %arg1 : i32, i32
  }
  func.func @transform_3(%arg0: i32, %arg1: i32) -> (i32, i32) {
    %c0_i32 = arith.constant 0 : i32
    return %arg0, %arg1 : i32, i32
  }
}

module attributes {stable_mosaic.version = 11 : i64} {
  func.func @kernel(%arg0: i32, %arg1: memref<1x8x96xf32, #tpu.memory_space<vmem>>, %arg2: memref<1x1x8xf32, #tpu.memory_space<vmem>>, %arg3: memref<1x8x32xf32, #tpu.memory_space<vmem>>) attributes {dimension_semantics = [#tpu.dimension_semantics<parallel>], iteration_bounds = array<i64: 2>, scalar_prefetch = 0 : i64, scratch_operands = 0 : i64, tpu.core_type = #tpu.core_type<tc>, window_params = [{transform_indices = @transform_0, window_bounds = array<i64: 1, 8, 96>}, {transform_indices = @transform_1, window_bounds = array<i64: 1, 1, 8>}, {transform_indices = @transform_2, window_bounds = array<i64: 1, 8, 32>}]} {
    %c0 = arith.constant 0 : index
    %c0_0 = arith.constant 0 : index
    %c0_1 = arith.constant 0 : index
    %0 = vector.load %arg1[%c0, %c0_0, %c0_1] : memref<1x8x96xf32, #tpu.memory_space<vmem>>, vector<1x8x96xf32>
    %1 = vector.shape_cast %0 : vector<1x8x96xf32> to vector<8x96xf32>
    %c0_2 = arith.constant 0 : index
    %c0_3 = arith.constant 0 : index
    %c0_4 = arith.constant 0 : index
    %2 = vector.load %arg2[%c0_2, %c0_3, %c0_4] : memref<1x1x8xf32, #tpu.memory_space<vmem>>, vector<1x1x8xf32>
    %3 = vector.shape_cast %2 : vector<1x1x8xf32> to vector<1x8xf32>
    %4 = vector.extract_strided_slice %1 {offsets = [0, 0], sizes = [8, 32], strides = [1, 1]} : vector<8x96xf32> to vector<8x32xf32>
    %5 = vector.extract_strided_slice %1 {offsets = [0, 32], sizes = [8, 32], strides = [1, 1]} : vector<8x96xf32> to vector<8x32xf32>
    %6 = vector.extract_strided_slice %1 {offsets = [0, 64], sizes = [8, 32], strides = [1, 1]} : vector<8x96xf32> to vector<8x32xf32>
    %7 = vector.extract_strided_slice %4 {offsets = [0, 0], sizes = [8, 16], strides = [1, 1]} : vector<8x32xf32> to vector<8x16xf32>
    %8 = arith.truncf %7 : vector<8x16xf32> to vector<8x16xbf16>
    %9 = vector.extract_strided_slice %5 {offsets = [0, 0], sizes = [8, 16], strides = [1, 1]} : vector<8x32xf32> to vector<8x16xf32>
    %10 = arith.truncf %9 : vector<8x16xf32> to vector<8x16xbf16>
    %11 = vector.extract_strided_slice %6 {offsets = [0, 0], sizes = [8, 16], strides = [1, 1]} : vector<8x32xf32> to vector<8x16xf32>
    %12 = arith.truncf %11 : vector<8x16xf32> to vector<8x16xbf16>
    %cst = arith.constant dense<0.000000e+00> : vector<8x8xf32>
    %13 = tpu.matmul %8, %10, %cst {dimension_numbers = #tpu.dot_dimension_numbers<[1], [1], [0], [0], [0, 0, 1, 0], [], []>} : vector<8x16xbf16>, vector<8x16xbf16>, vector<8x8xf32> -> vector<8x8xf32>
    %cst_5 = arith.constant 2.500000e-01 : f32
    %14 = vector.broadcast %cst_5 : f32 to vector<8x8xf32>
    %15 = arith.mulf %13, %14 : vector<8x8xf32>
    %16 = vector.broadcast %3 : vector<1x8xf32> to vector<8x8xf32>
    %17 = arith.addf %15, %16 : vector<8x8xf32>
    %cst_6 = arith.constant dense<0xFF800000> : vector<8xf32>
    %18 = vector.multi_reduction <maximumf>, %17, %cst_6 [1] : vector<8x8xf32> to vector<8xf32>
    %19 = vector.shape_cast %18 : vector<8xf32> to vector<8x1xf32>
    %20 = vector.broadcast %19 : vector<8x1xf32> to vector<8x8xf32>
    %21 = arith.subf %17, %20 : vector<8x8xf32>
    %22 = math.exp %21 : vector<8x8xf32>
    %cst_7 = arith.constant dense<0.000000e+00> : vector<8xf32>
    %23 = vector.multi_reduction <add>, %22, %cst_7 [1] : vector<8x8xf32> to vector<8xf32>
    %24 = vector.shape_cast %23 : vector<8xf32> to vector<8x1xf32>
    %25 = tpu.reciprocal %24 {approx = true} : vector<8x1xf32> -> vector<8x1xf32>
    %26 = vector.broadcast %25 : vector<8x1xf32> to vector<8x8xf32>
    %27 = arith.mulf %22, %26 : vector<8x8xf32>
    %28 = arith.truncf %27 : vector<8x8xf32> to vector<8x8xbf16>
    %cst_8 = arith.constant dense<0.000000e+00> : vector<8x16xf32>
    %29 = tpu.matmul %28, %12, %cst_8 {dimension_numbers = #tpu.dot_dimension_numbers<[1], [0], [0], [1], [0, 0, 1, 1], [], []>} : vector<8x8xbf16>, vector<8x16xbf16>, vector<8x16xf32> -> vector<8x16xf32>
    %30 = vector.extract_strided_slice %4 {offsets = [0, 16], sizes = [8, 16], strides = [1, 1]} : vector<8x32xf32> to vector<8x16xf32>
    %31 = arith.truncf %30 : vector<8x16xf32> to vector<8x16xbf16>
    %32 = vector.extract_strided_slice %5 {offsets = [0, 16], sizes = [8, 16], strides = [1, 1]} : vector<8x32xf32> to vector<8x16xf32>
    %33 = arith.truncf %32 : vector<8x16xf32> to vector<8x16xbf16>
    %34 = vector.extract_strided_slice %6 {offsets = [0, 16], sizes = [8, 16], strides = [1, 1]} : vector<8x32xf32> to vector<8x16xf32>
    %35 = arith.truncf %34 : vector<8x16xf32> to vector<8x16xbf16>
    %cst_9 = arith.constant dense<0.000000e+00> : vector<8x8xf32>
    %36 = tpu.matmul %31, %33, %cst_9 {dimension_numbers = #tpu.dot_dimension_numbers<[1], [1], [0], [0], [0, 0, 1, 0], [], []>} : vector<8x16xbf16>, vector<8x16xbf16>, vector<8x8xf32> -> vector<8x8xf32>
    %cst_10 = arith.constant 2.500000e-01 : f32
    %37 = vector.broadcast %cst_10 : f32 to vector<8x8xf32>
    %38 = arith.mulf %36, %37 : vector<8x8xf32>
    %39 = vector.broadcast %3 : vector<1x8xf32> to vector<8x8xf32>
    %40 = arith.addf %38, %39 : vector<8x8xf32>
    %cst_11 = arith.constant dense<0xFF800000> : vector<8xf32>
    %41 = vector.multi_reduction <maximumf>, %40, %cst_11 [1] : vector<8x8xf32> to vector<8xf32>
    %42 = vector.shape_cast %41 : vector<8xf32> to vector<8x1xf32>
    %43 = vector.broadcast %42 : vector<8x1xf32> to vector<8x8xf32>
    %44 = arith.subf %40, %43 : vector<8x8xf32>
    %45 = math.exp %44 : vector<8x8xf32>
    %cst_12 = arith.constant dense<0.000000e+00> : vector<8xf32>
    %46 = vector.multi_reduction <add>, %45, %cst_12 [1] : vector<8x8xf32> to vector<8xf32>
    %47 = vector.shape_cast %46 : vector<8xf32> to vector<8x1xf32>
    %48 = tpu.reciprocal %47 {approx = true} : vector<8x1xf32> -> vector<8x1xf32>
    %49 = vector.broadcast %48 : vector<8x1xf32> to vector<8x8xf32>
    %50 = arith.mulf %45, %49 : vector<8x8xf32>
    %51 = arith.truncf %50 : vector<8x8xf32> to vector<8x8xbf16>
    %cst_13 = arith.constant dense<0.000000e+00> : vector<8x16xf32>
    %52 = tpu.matmul %51, %35, %cst_13 {dimension_numbers = #tpu.dot_dimension_numbers<[1], [0], [0], [1], [0, 0, 1, 1], [], []>} : vector<8x8xbf16>, vector<8x16xbf16>, vector<8x16xf32> -> vector<8x16xf32>
    %53 = tpu.concatenate %29, %52 in 1 : vector<8x16xf32>, vector<8x16xf32> -> vector<8x32xf32>
    %c0_14 = arith.constant 0 : index
    %c0_15 = arith.constant 0 : index
    %c0_16 = arith.constant 0 : index
    %54 = vector.load %arg3[%c0_14, %c0_15, %c0_16] : memref<1x8x32xf32, #tpu.memory_space<vmem>>, vector<1x8x32xf32>
    %55 = vector.shape_cast %54 : vector<1x8x32xf32> to vector<8x32xf32>
    %56 = vector.shape_cast %53 : vector<8x32xf32> to vector<1x8x32xf32>
    tpu.vector_store %arg3[%c0_14, %c0_15, %c0_16], %56 {strides = array<i32>} : memref<1x8x32xf32, #tpu.memory_space<vmem>>, vector<1x8x32xf32>,
    return
  }
  func.func @transform_0(%arg0: i32) -> (i32, i32, i32) {
    %c0_i32 = arith.constant 0 : i32
    %c0_i32_0 = arith.constant 0 : i32
    %c0_i32_1 = arith.constant 0 : i32
    return %arg0, %c0_i32, %c0_i32_0 : i32, i32, i32
  }
  func.func @transform_1(%arg0: i32) -> (i32, i32, i32) {
    %c0_i32 = arith.constant 0 : i32
    %c0_i32_0 = arith.constant 0 : i32
    %c0_i32_1 = arith.constant 0 : i32
    return %arg0, %c0_i32, %c0_i32_0 : i32, i32, i32
  }
  func.func @transform_2(%arg0: i32) -> (i32, i32, i32) {
    %c0_i32 = arith.constant 0 : i32
    %c0_i32_0 = arith.constant 0 : i32
    %c0_i32_1 = arith.constant 0 : i32
    return %arg0, %c0_i32, %c0_i32_0 : i32, i32, i32
  }
}

module attributes {stable_mosaic.version = 11 : i64} {
  func.func @_ln_res_kernel(%arg0: i32, %arg1: memref<16x32xf32, #tpu.memory_space<vmem>>, %arg2: memref<16x32xf32, #tpu.memory_space<vmem>>, %arg3: memref<1x32xf32, #tpu.memory_space<vmem>>, %arg4: memref<1x32xf32, #tpu.memory_space<vmem>>, %arg5: memref<16x32xf32, #tpu.memory_space<vmem>>) attributes {dimension_semantics = [#tpu.dimension_semantics<parallel>], iteration_bounds = array<i64: 1>, scalar_prefetch = 0 : i64, scratch_operands = 0 : i64, tpu.core_type = #tpu.core_type<tc>, window_params = [{transform_indices = @transform_0, window_bounds = array<i64: 16, 32>}, {transform_indices = @transform_1, window_bounds = array<i64: 16, 32>}, {pipeline_mode = #tpu.pipeline_mode<synchronous>, transform_indices = @transform_2, window_bounds = array<i64: 1, 32>}, {pipeline_mode = #tpu.pipeline_mode<synchronous>, transform_indices = @transform_3, window_bounds = array<i64: 1, 32>}, {transform_indices = @transform_4, window_bounds = array<i64: 16, 32>}]} {
    %c0 = arith.constant 0 : index
    %c0_0 = arith.constant 0 : index
    %0 = vector.load %arg1[%c0, %c0_0] : memref<16x32xf32, #tpu.memory_space<vmem>>, vector<16x32xf32>
    %c0_1 = arith.constant 0 : index
    %c0_2 = arith.constant 0 : index
    %1 = vector.load %arg2[%c0_1, %c0_2] : memref<16x32xf32, #tpu.memory_space<vmem>>, vector<16x32xf32>
    %2 = arith.addf %0, %1 : vector<16x32xf32>
    %cst = arith.constant dense<0.000000e+00> : vector<16xf32>
    %3 = vector.multi_reduction <add>, %2, %cst [1] : vector<16x32xf32> to vector<16xf32>
    %4 = vector.shape_cast %3 : vector<16xf32> to vector<16x1xf32>
    %cst_3 = arith.constant 3.200000e+01 : f32
    %5 = vector.broadcast %cst_3 : f32 to vector<16x1xf32>
    %6 = arith.divf %4, %5 : vector<16x1xf32>
    %7 = vector.broadcast %6 : vector<16x1xf32> to vector<16x32xf32>
    %8 = arith.subf %2, %7 : vector<16x32xf32>
    %9 = arith.mulf %8, %8 : vector<16x32xf32>
    %cst_4 = arith.constant dense<0.000000e+00> : vector<16xf32>
    %10 = vector.multi_reduction <add>, %9, %cst_4 [1] : vector<16x32xf32> to vector<16xf32>
    %11 = vector.shape_cast %10 : vector<16xf32> to vector<16x1xf32>
    %cst_5 = arith.constant 3.200000e+01 : f32
    %12 = vector.broadcast %cst_5 : f32 to vector<16x1xf32>
    %13 = arith.divf %11, %12 : vector<16x1xf32>
    %14 = vector.broadcast %6 : vector<16x1xf32> to vector<16x32xf32>
    %15 = arith.subf %2, %14 : vector<16x32xf32>
    %cst_6 = arith.constant 9.99999996E-13 : f32
    %16 = vector.broadcast %cst_6 : f32 to vector<16x1xf32>
    %17 = arith.addf %13, %16 : vector<16x1xf32>
    %18 = math.rsqrt %17 : vector<16x1xf32>
    %19 = vector.broadcast %18 : vector<16x1xf32> to vector<16x32xf32>
    %20 = arith.mulf %15, %19 : vector<16x32xf32>
    %c0_7 = arith.constant 0 : index
    %c0_8 = arith.constant 0 : index
    %21 = vector.load %arg3[%c0_7, %c0_8] : memref<1x32xf32, #tpu.memory_space<vmem>>, vector<1x32xf32>
    %22 = vector.broadcast %21 : vector<1x32xf32> to vector<16x32xf32>
    %23 = arith.mulf %20, %22 : vector<16x32xf32>
    %c0_9 = arith.constant 0 : index
    %c0_10 = arith.constant 0 : index
    %24 = vector.load %arg4[%c0_9, %c0_10] : memref<1x32xf32, #tpu.memory_space<vmem>>, vector<1x32xf32>
    %25 = vector.broadcast %24 : vector<1x32xf32> to vector<16x32xf32>
    %26 = arith.addf %23, %25 : vector<16x32xf32>
    %c0_11 = arith.constant 0 : index
    %c0_12 = arith.constant 0 : index
    %27 = vector.load %arg5[%c0_11, %c0_12] : memref<16x32xf32, #tpu.memory_space<vmem>>, vector<16x32xf32>
    tpu.vector_store %arg5[%c0_11, %c0_12], %26 {strides = array<i32>} : memref<16x32xf32, #tpu.memory_space<vmem>>, vector<16x32xf32>,
    return
  }
  func.func @transform_0(%arg0: i32) -> (i32, i32) {
    %c0_i32 = arith.constant 0 : i32
    %c0_i32_0 = arith.constant 0 : i32
    return %arg0, %c0_i32 : i32, i32
  }
  func.func @transform_1(%arg0: i32) -> (i32, i32) {
    %c0_i32 = arith.constant 0 : i32
    %c0_i32_0 = arith.constant 0 : i32
    return %arg0, %c0_i32 : i32, i32
  }
  func.func @transform_2(%arg0: i32) -> (i32, i32) {
    %c0_i32 = arith.constant 0 : i32
    %c0_i32_0 = arith.constant 0 : i32
    %c0_i32_1 = arith.constant 0 : i32
    return %c0_i32, %c0_i32_0 : i32, i32
  }
  func.func @transform_3(%arg0: i32) -> (i32, i32) {
    %c0_i32 = arith.constant 0 : i32
    %c0_i32_0 = arith.constant 0 : i32
    %c0_i32_1 = arith.constant 0 : i32
    return %c0_i32, %c0_i32_0 : i32, i32
  }
  func.func @transform_4(%arg0: i32) -> (i32, i32) {
    %c0_i32 = arith.constant 0 : i32
    %c0_i32_0 = arith.constant 0 : i32
    return %arg0, %c0_i32 : i32, i32
  }
}

module attributes {stable_mosaic.version = 11 : i64} {
  func.func @kernel(%arg0: i32, %arg1: i32, %arg2: memref<16x32xf32, #tpu.memory_space<vmem>>, %arg3: memref<32x128xf32, #tpu.memory_space<vmem>>, %arg4: memref<1x128xf32, #tpu.memory_space<vmem>>, %arg5: memref<16x128xf32, #tpu.memory_space<vmem>>) attributes {dimension_semantics = [#tpu.dimension_semantics<parallel>, #tpu.dimension_semantics<parallel>], iteration_bounds = array<i64: 1, 1>, scalar_prefetch = 0 : i64, scratch_operands = 0 : i64, tpu.core_type = #tpu.core_type<tc>, window_params = [{transform_indices = @transform_0, window_bounds = array<i64: 16, 32>}, {transform_indices = @transform_1, window_bounds = array<i64: 32, 128>}, {transform_indices = @transform_2, window_bounds = array<i64: 1, 128>}, {transform_indices = @transform_3, window_bounds = array<i64: 16, 128>}]} {
    %c0 = arith.constant 0 : index
    %c0_0 = arith.constant 0 : index
    %0 = vector.load %arg2[%c0, %c0_0] : memref<16x32xf32, #tpu.memory_space<vmem>>, vector<16x32xf32>
    %1 = arith.truncf %0 : vector<16x32xf32> to vector<16x32xbf16>
    %c0_1 = arith.constant 0 : index
    %c0_2 = arith.constant 0 : index
    %2 = vector.load %arg3[%c0_1, %c0_2] : memref<32x128xf32, #tpu.memory_space<vmem>>, vector<32x128xf32>
    %3 = arith.truncf %2 : vector<32x128xf32> to vector<32x128xbf16>
    %cst = arith.constant dense<0.000000e+00> : vector<16x128xf32>
    %4 = tpu.matmul %1, %3, %cst {dimension_numbers = #tpu.dot_dimension_numbers<[1], [0], [0], [1], [0, 0, 1, 1], [], []>} : vector<16x32xbf16>, vector<32x128xbf16>, vector<16x128xf32> -> vector<16x128xf32>
    %c0_3 = arith.constant 0 : index
    %c0_4 = arith.constant 0 : index
    %5 = vector.load %arg4[%c0_3, %c0_4] : memref<1x128xf32, #tpu.memory_space<vmem>>, vector<1x128xf32>
    %6 = vector.broadcast %5 : vector<1x128xf32> to vector<16x128xf32>
    %7 = arith.addf %4, %6 : vector<16x128xf32>
    %cst_5 = arith.constant 5.000000e-01 : f32
    %8 = vector.broadcast %cst_5 : f32 to vector<16x128xf32>
    %9 = arith.mulf %8, %7 : vector<16x128xf32>
    %cst_6 = arith.constant 4.471500e-02 : f32
    %10 = vector.broadcast %cst_6 : f32 to vector<16x128xf32>
    %11 = arith.mulf %10, %7 : vector<16x128xf32>
    %12 = arith.mulf %11, %7 : vector<16x128xf32>
    %13 = arith.mulf %12, %7 : vector<16x128xf32>
    %14 = arith.addf %7, %13 : vector<16x128xf32>
    %cst_7 = arith.constant 0.797884583 : f32
    %15 = vector.broadcast %cst_7 : f32 to vector<16x128xf32>
    %16 = arith.mulf %15, %14 : vector<16x128xf32>
    %17 = math.tanh %16 : vector<16x128xf32>
    %cst_8 = arith.constant 1.000000e+00 : f32
    %18 = vector.broadcast %cst_8 : f32 to vector<16x128xf32>
    %19 = arith.addf %18, %17 : vector<16x128xf32>
    %20 = arith.mulf %9, %19 : vector<16x128xf32>
    %c0_9 = arith.constant 0 : index
    %c0_10 = arith.constant 0 : index
    %21 = vector.load %arg5[%c0_9, %c0_10] : memref<16x128xf32, #tpu.memory_space<vmem>>, vector<16x128xf32>
    tpu.vector_store %arg5[%c0_9, %c0_10], %20 {strides = array<i32>} : memref<16x128xf32, #tpu.memory_space<vmem>>, vector<16x128xf32>,
    return
  }
  func.func @transform_0(%arg0: i32, %arg1: i32) -> (i32, i32) {
    %c0_i32 = arith.constant 0 : i32
    %c0_i32_0 = arith.constant 0 : i32
    return %arg0, %c0_i32 : i32, i32
  }
  func.func @transform_1(%arg0: i32, %arg1: i32) -> (i32, i32) {
    %c0_i32 = arith.constant 0 : i32
    %c0_i32_0 = arith.constant 0 : i32
    return %c0_i32, %arg1 : i32, i32
  }
  func.func @transform_2(%arg0: i32, %arg1: i32) -> (i32, i32) {
    %c0_i32 = arith.constant 0 : i32
    %c0_i32_0 = arith.constant 0 : i32
    return %c0_i32, %arg1 : i32, i32
  }
  func.func @transform_3(%arg0: i32, %arg1: i32) -> (i32, i32) {
    %c0_i32 = arith.constant 0 : i32
    return %arg0, %arg1 : i32, i32
  }
}

module attributes {stable_mosaic.version = 11 : i64} {
  func.func @kernel(%arg0: i32, %arg1: i32, %arg2: memref<2x32xf32, #tpu.memory_space<vmem>>, %arg3: memref<32x128xf32, #tpu.memory_space<vmem>>, %arg4: memref<1x128xf32, #tpu.memory_space<vmem>>, %arg5: memref<2x128xf32, #tpu.memory_space<vmem>>) attributes {dimension_semantics = [#tpu.dimension_semantics<parallel>, #tpu.dimension_semantics<parallel>], iteration_bounds = array<i64: 1, 1>, scalar_prefetch = 0 : i64, scratch_operands = 0 : i64, tpu.core_type = #tpu.core_type<tc>, window_params = [{transform_indices = @transform_0, window_bounds = array<i64: 2, 32>}, {transform_indices = @transform_1, window_bounds = array<i64: 32, 128>}, {transform_indices = @transform_2, window_bounds = array<i64: 1, 128>}, {transform_indices = @transform_3, window_bounds = array<i64: 2, 128>}]} {
    %c0 = arith.constant 0 : index
    %c0_0 = arith.constant 0 : index
    %0 = vector.load %arg2[%c0, %c0_0] : memref<2x32xf32, #tpu.memory_space<vmem>>, vector<2x32xf32>
    %1 = arith.truncf %0 : vector<2x32xf32> to vector<2x32xbf16>
    %c0_1 = arith.constant 0 : index
    %c0_2 = arith.constant 0 : index
    %2 = vector.load %arg3[%c0_1, %c0_2] : memref<32x128xf32, #tpu.memory_space<vmem>>, vector<32x128xf32>
    %3 = arith.truncf %2 : vector<32x128xf32> to vector<32x128xbf16>
    %cst = arith.constant dense<0.000000e+00> : vector<2x128xf32>
    %4 = tpu.matmul %1, %3, %cst {dimension_numbers = #tpu.dot_dimension_numbers<[1], [0], [0], [1], [0, 0, 1, 1], [], []>} : vector<2x32xbf16>, vector<32x128xbf16>, vector<2x128xf32> -> vector<2x128xf32>
    %c0_3 = arith.constant 0 : index
    %c0_4 = arith.constant 0 : index
    %5 = vector.load %arg4[%c0_3, %c0_4] : memref<1x128xf32, #tpu.memory_space<vmem>>, vector<1x128xf32>
    %6 = vector.broadcast %5 : vector<1x128xf32> to vector<2x128xf32>
    %7 = arith.addf %4, %6 : vector<2x128xf32>
    %8 = math.tanh %7 : vector<2x128xf32>
    %c0_5 = arith.constant 0 : index
    %c0_6 = arith.constant 0 : index
    %9 = vector.load %arg5[%c0_5, %c0_6] : memref<2x128xf32, #tpu.memory_space<vmem>>, vector<2x128xf32>
    tpu.vector_store %arg5[%c0_5, %c0_6], %8 {strides = array<i32>} : memref<2x128xf32, #tpu.memory_space<vmem>>, vector<2x128xf32>,
    return
  }
  func.func @transform_0(%arg0: i32, %arg1: i32) -> (i32, i32) {
    %c0_i32 = arith.constant 0 : i32
    %c0_i32_0 = arith.constant 0 : i32
    return %arg0, %c0_i32 : i32, i32
  }
  func.func @transform_1(%arg0: i32, %arg1: i32) -> (i32, i32) {
    %c0_i32 = arith.constant 0 : i32
    %c0_i32_0 = arith.constant 0 : i32
    return %c0_i32, %arg1 : i32, i32
  }
  func.func @transform_2(%arg0: i32, %arg1: i32) -> (i32, i32) {
    %c0_i32 = arith.constant 0 : i32
    %c0_i32_0 = arith.constant 0 : i32
    return %c0_i32, %arg1 : i32, i32
  }
  func.func @transform_3(%arg0: i32, %arg1: i32) -> (i32, i32) {
    %c0_i32 = arith.constant 0 : i32
    return %arg0, %arg1 : i32, i32
  }
}

module attributes {stable_mosaic.version = 11 : i64} {
  func.func @kernel(%arg0: i32, %arg1: i32, %arg2: memref<2x32xf32, #tpu.memory_space<vmem>>, %arg3: memref<32x128xf32, #tpu.memory_space<vmem>>, %arg4: memref<1x128xf32, #tpu.memory_space<vmem>>, %arg5: memref<2x128xf32, #tpu.memory_space<vmem>>) attributes {dimension_semantics = [#tpu.dimension_semantics<parallel>, #tpu.dimension_semantics<parallel>], iteration_bounds = array<i64: 1, 1>, scalar_prefetch = 0 : i64, scratch_operands = 0 : i64, tpu.core_type = #tpu.core_type<tc>, window_params = [{transform_indices = @transform_0, window_bounds = array<i64: 2, 32>}, {transform_indices = @transform_1, window_bounds = array<i64: 32, 128>}, {transform_indices = @transform_2, window_bounds = array<i64: 1, 128>}, {transform_indices = @transform_3, window_bounds = array<i64: 2, 128>}]} {
    %c0 = arith.constant 0 : index
    %c0_0 = arith.constant 0 : index
    %0 = vector.load %arg2[%c0, %c0_0] : memref<2x32xf32, #tpu.memory_space<vmem>>, vector<2x32xf32>
    %1 = arith.truncf %0 : vector<2x32xf32> to vector<2x32xbf16>
    %c0_1 = arith.constant 0 : index
    %c0_2 = arith.constant 0 : index
    %2 = vector.load %arg3[%c0_1, %c0_2] : memref<32x128xf32, #tpu.memory_space<vmem>>, vector<32x128xf32>
    %3 = arith.truncf %2 : vector<32x128xf32> to vector<32x128xbf16>
    %cst = arith.constant dense<0.000000e+00> : vector<2x128xf32>
    %4 = tpu.matmul %1, %3, %cst {dimension_numbers = #tpu.dot_dimension_numbers<[1], [0], [0], [1], [0, 0, 1, 1], [], []>} : vector<2x32xbf16>, vector<32x128xbf16>, vector<2x128xf32> -> vector<2x128xf32>
    %c0_3 = arith.constant 0 : index
    %c0_4 = arith.constant 0 : index
    %5 = vector.load %arg4[%c0_3, %c0_4] : memref<1x128xf32, #tpu.memory_space<vmem>>, vector<1x128xf32>
    %6 = vector.broadcast %5 : vector<1x128xf32> to vector<2x128xf32>
    %7 = arith.addf %4, %6 : vector<2x128xf32>
    %c0_5 = arith.constant 0 : index
    %c0_6 = arith.constant 0 : index
    %8 = vector.load %arg5[%c0_5, %c0_6] : memref<2x128xf32, #tpu.memory_space<vmem>>, vector<2x128xf32>
    tpu.vector_store %arg5[%c0_5, %c0_6], %7 {strides = array<i32>} : memref<2x128xf32, #tpu.memory_space<vmem>>, vector<2x128xf32>,
    return
  }
  func.func @transform_0(%arg0: i32, %arg1: i32) -> (i32, i32) {
    %c0_i32 = arith.constant 0 : i32
    %c0_i32_0 = arith.constant 0 : i32
    return %arg0, %c0_i32 : i32, i32
  }
  func.func @transform_1(%arg0: i32, %arg1: i32) -> (i32, i32) {
    %c0_i32 = arith.constant 0 : i32
    %c0_i32_0 = arith.constant 0 : i32
    return %c0_i32, %arg1 : i32, i32
  }
  func.func @transform_2(%arg0: i32, %arg1: i32) -> (i32, i32) {
    %c0_i32 = arith.constant 0 : i32
    %c0_i32_0 = arith.constant 0 : i32
    return %c0_i32, %arg1 : i32, i32
  }
  func.func @transform_3(%arg0: i32, %arg1: i32) -> (i32, i32) {
    %c0_i32 = arith.constant 0 : i32
    return %arg0, %arg1 : i32, i32
  }
}

module attributes {stable_mosaic.version = 11 : i64} {
  func.func @kernel(%arg0: i32, %arg1: i32, %arg2: memref<16x64xf32, #tpu.memory_space<vmem>>, %arg3: memref<64x128xf32, #tpu.memory_space<vmem>>, %arg4: memref<1x128xf32, #tpu.memory_space<vmem>>, %arg5: memref<16x128xf32, #tpu.memory_space<vmem>>) attributes {dimension_semantics = [#tpu.dimension_semantics<parallel>, #tpu.dimension_semantics<parallel>], iteration_bounds = array<i64: 1, 1>, scalar_prefetch = 0 : i64, scratch_operands = 0 : i64, tpu.core_type = #tpu.core_type<tc>, window_params = [{transform_indices = @transform_0, window_bounds = array<i64: 16, 64>}, {transform_indices = @transform_1, window_bounds = array<i64: 64, 128>}, {transform_indices = @transform_2, window_bounds = array<i64: 1, 128>}, {transform_indices = @transform_3, window_bounds = array<i64: 16, 128>}]} {
    %c0 = arith.constant 0 : index
    %c0_0 = arith.constant 0 : index
    %0 = vector.load %arg2[%c0, %c0_0] : memref<16x64xf32, #tpu.memory_space<vmem>>, vector<16x64xf32>
    %1 = arith.truncf %0 : vector<16x64xf32> to vector<16x64xbf16>
    %c0_1 = arith.constant 0 : index
    %c0_2 = arith.constant 0 : index
    %2 = vector.load %arg3[%c0_1, %c0_2] : memref<64x128xf32, #tpu.memory_space<vmem>>, vector<64x128xf32>
    %3 = arith.truncf %2 : vector<64x128xf32> to vector<64x128xbf16>
    %cst = arith.constant dense<0.000000e+00> : vector<16x128xf32>
    %4 = tpu.matmul %1, %3, %cst {dimension_numbers = #tpu.dot_dimension_numbers<[1], [0], [0], [1], [0, 0, 1, 1], [], []>} : vector<16x64xbf16>, vector<64x128xbf16>, vector<16x128xf32> -> vector<16x128xf32>
    %c0_3 = arith.constant 0 : index
    %c0_4 = arith.constant 0 : index
    %5 = vector.load %arg4[%c0_3, %c0_4] : memref<1x128xf32, #tpu.memory_space<vmem>>, vector<1x128xf32>
    %6 = vector.broadcast %5 : vector<1x128xf32> to vector<16x128xf32>
    %7 = arith.addf %4, %6 : vector<16x128xf32>
    %c0_5 = arith.constant 0 : index
    %c0_6 = arith.constant 0 : index
    %8 = vector.load %arg5[%c0_5, %c0_6] : memref<16x128xf32, #tpu.memory_space<vmem>>, vector<16x128xf32>
    tpu.vector_store %arg5[%c0_5, %c0_6], %7 {strides = array<i32>} : memref<16x128xf32, #tpu.memory_space<vmem>>, vector<16x128xf32>,
    return
  }
  func.func @transform_0(%arg0: i32, %arg1: i32) -> (i32, i32) {
    %c0_i32 = arith.constant 0 : i32
    %c0_i32_0 = arith.constant 0 : i32
    return %arg0, %c0_i32 : i32, i32
  }
  func.func @transform_1(%arg0: i32, %arg1: i32) -> (i32, i32) {
    %c0_i32 = arith.constant 0 : i32
    %c0_i32_0 = arith.constant 0 : i32
    return %c0_i32, %arg1 : i32, i32
  }
  func.func @transform_2(%arg0: i32, %arg1: i32) -> (i32, i32) {
    %c0_i32 = arith.constant 0 : i32
    %c0_i32_0 = arith.constant 0 : i32
    return %c0_i32, %arg1 : i32, i32
  }
  func.func @transform_3(%arg0: i32, %arg1: i32) -> (i32, i32) {
    %c0_i32 = arith.constant 0 : i32
    return %arg0, %arg1 : i32, i32
  }
}

module attributes {stable_mosaic.version = 11 : i64} {
  func.func @kernel(%arg0: i32, %arg1: memref<2x3xf32, #tpu.memory_space<vmem>>, %arg2: memref<2x3xf32, #tpu.memory_space<vmem>>, %arg3: memref<1x1xf32, #tpu.memory_space<vmem>>) attributes {dimension_semantics = [#tpu.dimension_semantics<arbitrary>], iteration_bounds = array<i64: 1>, scalar_prefetch = 0 : i64, scratch_operands = 0 : i64, tpu.core_type = #tpu.core_type<tc>, window_params = [{pipeline_mode = #tpu.pipeline_mode<synchronous>, transform_indices = @transform_0, window_bounds = array<i64: 2, 3>}, {pipeline_mode = #tpu.pipeline_mode<synchronous>, transform_indices = @transform_1, window_bounds = array<i64: 2, 3>}, {pipeline_mode = #tpu.pipeline_mode<synchronous>, transform_indices = @transform_2, window_bounds = array<i64: 1, 1>}]} {
    %c0 = arith.constant 0 : index
    %c0_0 = arith.constant 0 : index
    %0 = vector.load %arg1[%c0, %c0_0] : memref<2x3xf32, #tpu.memory_space<vmem>>, vector<2x3xf32>
    %cst = arith.constant dense<0xFF800000> : vector<2xf32>
    %1 = vector.multi_reduction <maximumf>, %0, %cst [1] : vector<2x3xf32> to vector<2xf32>
    %2 = vector.shape_cast %1 : vector<2xf32> to vector<2x1xf32>
    %3 = vector.broadcast %2 : vector<2x1xf32> to vector<2x3xf32>
    %4 = arith.subf %0, %3 : vector<2x3xf32>
    %5 = math.exp %4 : vector<2x3xf32>
    %cst_1 = arith.constant dense<0.000000e+00> : vector<2xf32>
    %6 = vector.multi_reduction <add>, %5, %cst_1 [1] : vector<2x3xf32> to vector<2xf32>
    %7 = vector.shape_cast %6 : vector<2xf32> to vector<2x1xf32>
    %8 = math.log %7 : vector<2x1xf32>
    %9 = arith.addf %8, %2 : vector<2x1xf32>
    %c0_2 = arith.constant 0 : index
    %c0_3 = arith.constant 0 : index
    %10 = vector.load %arg2[%c0_2, %c0_3] : memref<2x3xf32, #tpu.memory_space<vmem>>, vector<2x3xf32>
    %11 = vector.broadcast %9 : vector<2x1xf32> to vector<2x3xf32>
    %12 = arith.subf %0, %11 : vector<2x3xf32>
    %13 = arith.mulf %10, %12 : vector<2x3xf32>
    %cst_4 = arith.constant dense<0.000000e+00> : vector<2xf32>
    %14 = vector.multi_reduction <add>, %13, %cst_4 [1] : vector<2x3xf32> to vector<2xf32>
    %15 = vector.shape_cast %14 : vector<2xf32> to vector<2x1xf32>
    %cst_5 = arith.constant 0.000000e+00 : f32
    %16 = vector.broadcast %cst_5 : f32 to vector<2x1xf32>
    %17 = arith.subf %16, %15 : vector<2x1xf32>
    %cst_6 = arith.constant dense<0.000000e+00> : vector<1xf32>
    %18 = vector.multi_reduction <add>, %17, %cst_6 [0] : vector<2x1xf32> to vector<1xf32>
    %19 = vector.shape_cast %18 : vector<1xf32> to vector<1x1xf32>
    %cst_7 = arith.constant 2.000000e+00 : f32
    %20 = vector.broadcast %cst_7 : f32 to vector<1x1xf32>
    %21 = arith.divf %19, %20 : vector<1x1xf32>
    %c0_8 = arith.constant 0 : index
    %c0_9 = arith.constant 0 : index
    %22 = vector.load %arg3[%c0_8, %c0_9] : memref<1x1xf32, #tpu.memory_space<vmem>>, vector<1x1xf32>
    tpu.vector_store %arg3[%c0_8, %c0_9], %21 {strides = array<i32>} : memref<1x1xf32, #tpu.memory_space<vmem>>, vector<1x1xf32>,
    return
  }
  func.func @transform_0(%arg0: i32) -> (i32, i32) {
    %c0_i32 = arith.constant 0 : i32
    %c0_i32_0 = arith.constant 0 : i32
    %c0_i32_1 = arith.constant 0 : i32
    return %c0_i32, %c0_i32_0 : i32, i32
  }
  func.func @transform_1(%arg0: i32) -> (i32, i32) {
    %c0_i32 = arith.constant 0 : i32
    %c0_i32_0 = arith.constant 0 : i32
    %c0_i32_1 = arith.constant 0 : i32
    return %c0_i32, %c0_i32_0 : i32, i32
  }
  func.func @transform_2(%arg0: i32) -> (i32, i32) {
    %c0_i32 = arith.constant 0 : i32
    %c0_i32_0 = arith.constant 0 : i32
    %c0_i32_1 = arith.constant 0 : i32
    return %c0_i32, %c0_i32_0 : i32, i32
  }
}

</mosaic_0001>

<bundles_post_ra>
// kernel: _lambda_.21
= control target key start
LH: loop header
LB: loop body
LE: loop exit
PB: predicated region body
PF: predicated region fallthrough
CT: control target
= control target key end

     0   :  { %s412_s9 = smov 0   ;;  %s451_s0 = inlined_call_operand.vmem [shape: f32[2,8,96], index: 0, kind: input, shape index: {}]   ;;  %s452_s1 = inlined_call_operand.vmem [shape: f32[2,1,8], index: 1, kind: input, shape index: {}]   ;;  %s453_s2 = inlined_call_operand.vmem [shape: f32[2,8,32], index: 2, kind: output, shape index: {}]  }
   0x1 LB: > { %s347_s10 = sadd.s32 4294967295, %s389_s9   ;;  %p351_p0 = scmp.ge.s32.totalorder %s389_s9, 1  ;;  %s389_s9 = sphi %s412_s9, %s12_s9  }
   0x2   : > { %p119_p1 = scmp.lt.s32.totalorder %s389_s9, 3 }
   0x4   : > { %p120_p2 = pnand %p351_p0, %p119_p1 }
   0x5   : > { %p142_p3 = scmp.lt.s32.totalorder (!%p120_p2), %s347_s10, 1  ;;  %s391_s15 = smov (!%p120_p2), 96  }
   0x6   : > { %123 = sbr.rel (%p120_p2) target bundleno = 757 (0x2f5), region = 28  ;;  %s392_s16 = smov (!%p120_p2), 80  }
   0x7   : > { %s393_s17 = smov (!%p120_p2), 112   ;;  %s394_s21 = smov (!%p120_p2), 48  }
   0x8   : > { %s395_s22 = smov (!%p120_p2), 64   ;;  %s396_s23 = smov (!%p120_p2), 16  }
   0xb   : > { %s455_s10 = smov (!%p142_p3, %s347_s10), 1  ;;  %vm160_vm0 = vcmask 130048   ;;  %vm185_vm1 = vcmask 64512   ;;  %vm203_vm2 = vcmask 1043456   ;;  %vm283_vm3 = vcmask 261120  }
   0xc   : > { %s352_s11 = sshll.u32 %s455_s10, 3  ;;  %s148_s20 = scalar_lea.vmem %s452_s1, %s455_s10 }
   0xd   : > { %s145_s14 = scalar_lea.vmem %s451_s0, %s352_s11  ;;  %v374_v7 = vld [vmem:[%s148_s20] ss:$0 sm:$0xff]  ;;  %s152_s26 = scalar_lea.vmem %s453_s2, %s352_s11 }
   0xe   : > { %v154_v0 = vld [vmem:[%s145_s14] sm:$0xff] }
   0xf   : > { %v156_v1 = vpack.c.bf16 %v154_v0, %v154_v0 }
  0x11   : > { %158 = vrot.lane.b32.xlu1 %v156_v1, %s391_s15  ;;  %222 = vrot.lane.b32.xlu0 %v156_v1, %s392_s16 }
  0x19   : > { %220 = vrot.lane.b32.xlu0 %v156_v1, %s393_s17 }
  0x21   : > { %257 = vrot.lane.b32.xlu0 %v156_v1, %s394_s21 }
  0x29   : > { %198 = vrot.lane.b32.xlu0 %v156_v1, %s395_s22 }
  0x83   : > { %v159_v2 = vpop.permute.xlu1 %158  ;;  %v223_v3 = vpop.permute.xlu0 %222 }
  0x84   : > { %v165_v4 = vsel %vm160_vm0, %v159_v2, 0  ;;  %v228_v5 = vsel %vm160_vm0, %v223_v3, 0 }
  0x85   : > { %174 = vmatpush.bf16.xpose.msra.mxu0 %v165_v4  ;;  %237 = vmatpush.bf16.xpose.msra.mxu2 %v228_v5 }
  0x8b   : > { %v221_v6 = vpop.permute.xlu0 %220 }
  0x8c   : > { %354 = vmatmul.msk.bf16.vlgmr.msra.gmra.mxu0 %vm160_vm0, %v156_v1  ;;  %356 = vmatmul.msk.bf16.vlgmr.msra.gmra.mxu2 %vm160_vm0, %v221_v6 }
  0x93   : > { %v258_v28 = vpop.permute.xlu0 %257 }
  0x94   : > { %v263_v29 = vsel %vm203_vm2, %v258_v28, 0 }
  0x95   : > { %272 = vmatpush.bf16.msra.mxu3 %v263_v29 }
  0x9b   : > { %v199_v30 = vpop.permute.xlu0 %198 }
  0x9c   : > { %v205_v31 = vsel %vm203_vm2, %v199_v30, 0 }
  0x9d   : > { %214 = vmatpush.bf16.msra.mxu1 %v205_v31 }
 0x109   : > { %v176_v8 = vpop.f32.mrf.mxu0 }
 0x10a   : > { %v180_v9 = vmul.f32 0.25, %v176_v8 }
 0x10c   : > { %v184_v10 = vadd.f32 %v374_v7, %v180_v9 }
 0x10e   : > { %v186_v11 = vsel %vm185_vm1, %v184_v10, -inf }
 0x10f   : > { %187 = vmax.xlane.f32.xlu2 %v186_v11  ;;  %v239_v12 = vpop.f32.mrf.mxu2 }
 0x110   : > { %v243_v13 = vmul.f32 0.25, %v239_v12 }
 0x111   : > { %v178_v14 = vpop.f32.mrf.mxu0 }
 0x112   : > { %v244_v15 = vadd.f32 %v374_v7, %v243_v13 }
 0x114   : > { %v245_v16 = vsel %vm185_vm1, %v244_v15, -inf }
 0x115   : > { %246 = vmax.xlane.f32.xlu1 %v245_v16 }
 0x117   : > { %v241_v17 = vpop.f32.mrf.mxu2 }
 0x182   : > { %v188_v18 = vpop.xlane.xlu2 %187 }
 0x183   : > { %v189_v21 = vsub.f32 %v184_v10, %v188_v18 }
 0x185   : > { %v190_v23 = vmul.f32 1.442695, %v189_v21 }
 0x188   : > { %v247_v19 = vpop.xlane.xlu1 %246 }
 0x189   : > { %v248_v20 = vsub.f32 %v244_v15, %v247_v19 }
 0x18b   : > { %v249_v22 = vmul.f32 1.442695, %v248_v20 }
 0x18d   : > { %375 = vpow2.f32 %v249_v22 }
 0x18e   : > { %377 = vpow2.f32 %v190_v23 }
 0x193   : > { %v376_v24 = vpop.eup %375 }
 0x194   : > { %v251_v25 = vsel %vm185_vm1, %v376_v24, 0.0  ;;  %v378_v26 = vpop.eup %377 }
 0x195   : > { %252 = vadd.xlane.f32.xlu2 %v251_v25  ;;  %v192_v27 = vsel %vm185_vm1, %v378_v26, 0.0 }
 0x19d   : > { %193 = vadd.xlane.f32.xlu2 %v192_v27 }
 0x208   : > { %v253_v32 = vpop.xlane.xlu2 %252 }
 0x209   : > { %379 = vrcp.f32 %v253_v32 }
 0x20f   : > { %v380_v33 = vpop.eup %379 }
 0x210   : > { %v194_v34 = vpop.xlane.xlu2 %193  ;;  %v255_v35 = vmul.f32 %v380_v33, %v376_v24 }
 0x211   : > { %381 = vrcp.f32 %v194_v34 }
 0x212   : > { %v256_v36 = vpack.c.bf16 %v255_v35, %v255_v35 }
 0x214   : > { %357 = vmatmul.msk.bf16.vlgmr.msra.gmra.mxu3 %vm185_vm1, %v256_v36 }
 0x217   : > { %v382_v37 = vpop.eup %381 }
 0x218   : > { %v196_v38 = vmul.f32 %v382_v37, %v378_v26 }
 0x21a   : > { %v197_v39 = vpack.c.bf16 %v196_v38, %v196_v38 }
 0x21c   : > { %355 = vmatmul.msk.bf16.vlgmr.msra.gmra.mxu1 %vm185_vm1, %v197_v39 }
 0x297   : > { %v274_v40 = vpop.f32.mrf.mxu3 }
 0x298   : > { %279 = vrot.lane.b32.xlu2 %v274_v40, %s396_s23 }
 0x299   : > { %v216_v41 = vpop.f32.mrf.mxu1 }
 0x29f   : > { %v276_v42 = vpop.f32.mrf.mxu3 }
 0x2a1   : > { %v218_v43 = vpop.f32.mrf.mxu1 }
 0x2f2   : > { %v280_v44 = vpop.permute.xlu2 %279 }
 0x2f3   : > { %v282_v45 = vsel %vm160_vm0, %v216_v41, %v280_v44 }
 0x2f4   : > { %284 = vst.msk [vmem:[%s152_s26] sm:$0xff] %vm283_vm3, %v282_v45 }
 0x2f5 PF: > { %s12_s9 = sadd.s32 1, %s389_s9  }
 0x2f6   : > { %p9_p4 = scmp.ge.s32.totalorder %s12_s9, 4  }
 0x2f8   :  { %11 = sbr.rel (!%p9_p4) target bundleno = 1 (0x1), region = 61 }

// kernel: _lambda_.20
= control target key start
LH: loop header
LB: loop body
LE: loop exit
PB: predicated region body
PF: predicated region fallthrough
CT: control target
= control target key end

     0   :  { %vm28_vm0 = vcmask 261120   ;;  %s101_s1 = inlined_call_operand.vmem [shape: f32[32,128], index: 1, kind: input, shape index: {}]   ;;  %s102_s0 = inlined_call_operand.vmem [shape: f32[16,32], index: 0, kind: input, shape index: {}]   ;;  %s103_s2 = inlined_call_operand.vmem [shape: f32[1,128], index: 2, kind: input, shape index: {}]   ;;  %s104_s3 = inlined_call_operand.vmem [shape: f32[16,128], index: 3, kind: output, shape index: {}]  }
   0x1   :  { %v20_v0 = vld [vmem:[%s101_s1 + $0x10] sm:$0xff]  ;;  %v21_v1 = vld [vmem:[%s101_s1 + $0x18] sm:$0xff]  ;;  %v18_v2 = vld [vmem:[%s101_s1] sm:$0xff] }
   0x2   :  { %v23_v3 = vpack.c.bf16 %v21_v1, %v20_v0  ;;  %v19_v4 = vld [vmem:[%s101_s1 + $0x8] sm:$0xff]  ;;  %v15_v6 = vld [vmem:[%s102_s0] sm:$0xff] }
   0x3   :  { %v22_v5 = vpack.c.bf16 %v19_v4, %v18_v2  ;;  %v16_v7 = vld [vmem:[%s102_s0 + $0x8] sm:$0xff]  ;;  %v53_v9 = vld [vmem:[%s103_s2] ss:$0 sm:$0xff] }
   0x4   :  { %38 = vmatpush.bf16.msra.mxu0 %v23_v3  ;;  %v17_v8 = vpack.c.bf16 %v16_v7, %v15_v6 }
   0x8   :  { %39 = vmatpush.bf16.msra.mxu0 %v22_v5 }
   0xb   :  { %52 = vmatmul.msk.bf16.vlgmr.msra.gmra.mxu0 %vm28_vm0, %v17_v8 }
  0x88   :  { %v41_v10 = vpop.f32.mrf.mxu0 }
  0x89   :  { %v42_v11 = vadd.f32 %v53_v9, %v41_v10 }
  0x8b   :  { %46 = vst [vmem:[%s104_s3] sm:$0xff] %v42_v11 }
  0x90   :  { %v43_v12 = vpop.f32.mrf.mxu0 }
  0x91   :  { %v44_v13 = vadd.f32 %v53_v9, %v43_v12 }
  0x93   :  { %47 = vst [vmem:[%s104_s3 + $0x8] sm:$0xff] %v44_v13 }

// kernel: _lambda_.19
= control target key start
LH: loop header
LB: loop body
LE: loop exit
PB: predicated region body
PF: predicated region fallthrough
CT: control target
= control target key end

     0   :  { %vm16_vm0 = vcmask 261120   ;;  %v95_v4 = vmov 32.0   ;;  %s140_s0 = inlined_call_operand.vmem [shape: f32[16,32], index: 0, kind: input, shape index: {}]   ;;  %s141_s1 = inlined_call_operand.vmem [shape: f32[1,32], index: 1, kind: input, shape index: {}]   ;;  %s142_s2 = inlined_call_operand.vmem [shape: f32[1,32], index: 2, kind: input, shape index: {}]   ;;  %s143_s3 = inlined_call_operand.vmem [shape: f32[16,32], index: 3, kind: output, shape index: {}]  }
   0x1   :  { %v14_v0 = vld [vmem:[%s140_s0] sm:$0xff]  ;;  %v15_v2 = vld [vmem:[%s140_s0 + $0x8] sm:$0xff]  ;;  %89 = vrcp.f32 %v95_v4 }
   0x2   :  { %v17_v1 = vsel %vm16_vm0, %v14_v0, 0.0  ;;  %v20_v3 = vsel %vm16_vm0, %v15_v2, 0.0  ;;  %v87_v35 = vld [vmem:[%s141_s1] ss:$0 sm:$0xff] }
   0x3   :  { %18 = vadd.xlane.f32.xlu0 %v17_v1  ;;  %v88_v38 = vld [vmem:[%s142_s2] ss:$0 sm:$0xff] }
   0x7   :  { %v90_v5 = vpop.eup %89 }
   0x8   :  { %v24_v6 = vmul.f32 32.0, %v90_v5  ;;  %vm28_vm1 = vweird.f32 %v90_v5 }
   0xa   :  { %v25_v7 = vsub.f32 1.0, %v24_v6 }
   0xb   :  { %21 = vadd.xlane.f32.xlu0 %v20_v3 }
   0xc   :  { %v26_v8 = vmul.f32 %v90_v5, %v25_v7 }
   0xe   :  { %v27_v9 = vadd.f32 %v90_v5, %v26_v8 }
  0x10   :  { %v29_v10 = vsel %vm28_vm1, %v90_v5, %v27_v9 }
  0x76   :  { %v19_v11 = vpop.xlane.xlu0 %18 }
  0x77   :  { %v30_v12 = vmul.f32 %v29_v10, %v19_v11 }
  0x79   :  { %v32_v13 = vsub.f32 %v14_v0, %v30_v12 }
  0x7b   :  { %v34_v14 = vmul.f32 %v32_v13, %v32_v13 }
  0x7d   :  { %v36_v15 = vsel %vm16_vm0, %v34_v14, 0.0 }
  0x7e   :  { %37 = vadd.xlane.f32.xlu1 %v36_v15  ;;  %v22_v16 = vpop.xlane.xlu0 %21 }
  0x7f   :  { %v31_v17 = vmul.f32 %v29_v10, %v22_v16 }
  0x81   :  { %v33_v18 = vsub.f32 %v15_v2, %v31_v17 }
  0x83   :  { %v35_v19 = vmul.f32 %v33_v18, %v33_v18 }
  0x85   :  { %v39_v20 = vsel %vm16_vm0, %v35_v19, 0.0 }
  0x86   :  { %40 = vadd.xlane.f32.xlu1 %v39_v20 }
  0xf1   :  { %v38_v21 = vpop.xlane.xlu1 %37 }
  0xf2   :  { %v42_v22 = vmul.f32 %v38_v21, %v29_v10 }
  0xf4   :  { %v44_v23 = vadd.f32 1e-12, %v42_v22 }
  0xf6   :  { %91 = vrsqrt.f32 %v44_v23  ;;  %vm52_vm3 = vweird.f32 %v44_v23 }
  0xf9   :  { %v41_v24 = vpop.xlane.xlu1 %40 }
  0xfa   :  { %v43_v25 = vmul.f32 %v41_v24, %v29_v10 }
  0xfc   :  { %v92_v26 = vpop.eup %91  ;;  %v45_v27 = vadd.f32 1e-12, %v43_v25 }
  0xfd   :  { %v47_v28 = vmul.f32 %v92_v26, %v44_v23  ;;  %vm53_vm2 = vweird.f32 %v92_v26 }
  0xfe   :  { %93 = vrsqrt.f32 %v45_v27  ;;  %vm54_vm4 = vmor %vm52_vm3, %vm53_vm2  ;;  %vm62_vm6 = vweird.f32 %v45_v27 }
  0xff   :  { %v48_v29 = vmul.f32 %v92_v26, %v47_v28 }
 0x101   :  { %v49_v30 = vmul.f32 0.5, %v48_v29 }
 0x103   :  { %v50_v31 = vsub.f32 1.5, %v49_v30 }
 0x104   :  { %v94_v32 = vpop.eup %93 }
 0x105   :  { %v51_v33 = vmul.f32 %v92_v26, %v50_v31  ;;  %v57_v34 = vmul.f32 %v94_v32, %v45_v27  ;;  %vm63_vm5 = vweird.f32 %v94_v32 }
 0x106   :  { %vm64_vm7 = vmor %vm62_vm6, %vm63_vm5 }
 0x107   :  { %v55_v36 = vsel %vm54_vm4, %v92_v26, %v51_v33  ;;  %v58_v37 = vmul.f32 %v94_v32, %v57_v34 }
 0x108   :  { %v66_v39 = vmul.f32 %v55_v36, %v32_v13 }
 0x109   :  { %v59_v40 = vmul.f32 0.5, %v58_v37 }
 0x10a   :  { %v72_v41 = vmul.f32 %v87_v35, %v66_v39 }
 0x10b   :  { %v60_v42 = vsub.f32 1.5, %v59_v40 }
 0x10c   :  { %v78_v43 = vadd.f32 %v88_v38, %v72_v41 }
 0x10d   :  { %v61_v44 = vmul.f32 %v94_v32, %v60_v42 }
 0x10e   :  { %80 = vst.msk [vmem:[%s143_s3] sm:$0xff] %vm16_vm0, %v78_v43 }
 0x10f   :  { %v65_v45 = vsel %vm64_vm7, %v94_v32, %v61_v44 }
 0x110   :  { %v67_v46 = vmul.f32 %v65_v45, %v33_v18 }
 0x112   :  { %v73_v47 = vmul.f32 %v87_v35, %v67_v46 }
 0x114   :  { %v79_v48 = vadd.f32 %v88_v38, %v73_v47 }
 0x116   :  { %81 = vst.msk [vmem:[%s143_s3 + $0x8] sm:$0xff] %vm16_vm0, %v79_v48 }

// kernel: _lambda_.23
= control target key start
LH: loop header
LB: loop body
LE: loop exit
PB: predicated region body
PF: predicated region fallthrough
CT: control target
= control target key end

     0   :  { %vm23_vm0 = vcmask 261120   ;;  %v102_v8 = vmov 32.0   ;;  %s158_s0 = inlined_call_operand.vmem [shape: f32[16,32], index: 0, kind: input, shape index: {}]   ;;  %s159_s1 = inlined_call_operand.vmem [shape: f32[16,32], index: 1, kind: input, shape index: {}]   ;;  %s160_s2 = inlined_call_operand.vmem [shape: f32[1,32], index: 2, kind: input, shape index: {}]   ;;  %s161_s3 = inlined_call_operand.vmem [shape: f32[1,32], index: 3, kind: input, shape index: {}]   ;;  %s162_s4 = inlined_call_operand.vmem [shape: f32[16,32], index: 4, kind: output, shape index: {}]  }
   0x1   :  { %v17_v0 = vld [vmem:[%s158_s0] sm:$0xff]  ;;  %v18_v3 = vld [vmem:[%s158_s0 + $0x8] sm:$0xff]  ;;  %96 = vrcp.f32 %v102_v8 }
   0x2   :  { %v19_v1 = vld [vmem:[%s159_s1] sm:$0xff]  ;;  %v20_v4 = vld [vmem:[%s159_s1 + $0x8] sm:$0xff] }
   0x3   :  { %v21_v2 = vadd.f32 %v19_v1, %v17_v0  ;;  %v22_v6 = vadd.f32 %v20_v4, %v18_v3  ;;  %v94_v39 = vld [vmem:[%s160_s2] ss:$0 sm:$0xff] }
   0x4   :  { %v95_v42 = vld [vmem:[%s161_s3] ss:$0 sm:$0xff] }
   0x5   :  { %v24_v5 = vsel %vm23_vm0, %v21_v2, 0.0  ;;  %v27_v7 = vsel %vm23_vm0, %v22_v6, 0.0 }
   0x6   :  { %25 = vadd.xlane.f32.xlu0 %v24_v5 }
   0x7   :  { %v97_v9 = vpop.eup %96 }
   0x8   :  { %v31_v10 = vmul.f32 32.0, %v97_v9  ;;  %vm35_vm1 = vweird.f32 %v97_v9 }
   0xa   :  { %v32_v11 = vsub.f32 1.0, %v31_v10 }
   0xc   :  { %v33_v12 = vmul.f32 %v97_v9, %v32_v11 }
   0xe   :  { %28 = vadd.xlane.f32.xlu0 %v27_v7  ;;  %v34_v13 = vadd.f32 %v97_v9, %v33_v12 }
  0x10   :  { %v36_v14 = vsel %vm35_vm1, %v97_v9, %v34_v13 }
  0x79   :  { %v26_v15 = vpop.xlane.xlu0 %25 }
  0x7a   :  { %v37_v16 = vmul.f32 %v36_v14, %v26_v15 }
  0x7c   :  { %v39_v17 = vsub.f32 %v21_v2, %v37_v16 }
  0x7e   :  { %v41_v18 = vmul.f32 %v39_v17, %v39_v17 }
  0x80   :  { %v43_v19 = vsel %vm23_vm0, %v41_v18, 0.0 }
  0x81   :  { %44 = vadd.xlane.f32.xlu1 %v43_v19  ;;  %v29_v20 = vpop.xlane.xlu0 %28 }
  0x82   :  { %v38_v21 = vmul.f32 %v36_v14, %v29_v20 }
  0x84   :  { %v40_v22 = vsub.f32 %v22_v6, %v38_v21 }
  0x86   :  { %v42_v23 = vmul.f32 %v40_v22, %v40_v22 }
  0x88   :  { %v46_v24 = vsel %vm23_vm0, %v42_v23, 0.0 }
  0x89   :  { %47 = vadd.xlane.f32.xlu1 %v46_v24 }
  0xf4   :  { %v45_v25 = vpop.xlane.xlu1 %44 }
  0xf5   :  { %v49_v26 = vmul.f32 %v45_v25, %v36_v14 }
  0xf7   :  { %v51_v27 = vadd.f32 1e-12, %v49_v26 }
  0xf9   :  { %98 = vrsqrt.f32 %v51_v27  ;;  %vm59_vm3 = vweird.f32 %v51_v27 }
  0xfc   :  { %v48_v28 = vpop.xlane.xlu1 %47 }
  0xfd   :  { %v50_v29 = vmul.f32 %v48_v28, %v36_v14 }
  0xff   :  { %v99_v30 = vpop.eup %98  ;;  %v52_v31 = vadd.f32 1e-12, %v50_v29 }
 0x100   :  { %v54_v32 = vmul.f32 %v99_v30, %v51_v27  ;;  %vm60_vm2 = vweird.f32 %v99_v30 }
 0x101   :  { %100 = vrsqrt.f32 %v52_v31  ;;  %vm61_vm4 = vmor %vm59_vm3, %vm60_vm2  ;;  %vm69_vm6 = vweird.f32 %v52_v31 }
 0x102   :  { %v55_v33 = vmul.f32 %v99_v30, %v54_v32 }
 0x104   :  { %v56_v34 = vmul.f32 0.5, %v55_v33 }
 0x106   :  { %v57_v35 = vsub.f32 1.5, %v56_v34 }
 0x107   :  { %v101_v36 = vpop.eup %100 }
 0x108   :  { %v58_v37 = vmul.f32 %v99_v30, %v57_v35  ;;  %v64_v38 = vmul.f32 %v101_v36, %v52_v31  ;;  %vm70_vm5 = vweird.f32 %v101_v36 }
 0x109   :  { %vm71_vm7 = vmor %vm69_vm6, %vm70_vm5 }
 0x10a   :  { %v62_v40 = vsel %vm61_vm4, %v99_v30, %v58_v37  ;;  %v65_v41 = vmul.f32 %v101_v36, %v64_v38 }
 0x10b   :  { %v73_v43 = vmul.f32 %v62_v40, %v39_v17 }
 0x10c   :  { %v66_v44 = vmul.f32 0.5, %v65_v41 }
 0x10d   :  { %v79_v45 = vmul.f32 %v94_v39, %v73_v43 }
 0x10e   :  { %v67_v46 = vsub.f32 1.5, %v66_v44 }
 0x10f   :  { %v85_v47 = vadd.f32 %v95_v42, %v79_v45 }
 0x110   :  { %v68_v48 = vmul.f32 %v101_v36, %v67_v46 }
 0x111   :  { %87 = vst.msk [vmem:[%s162_s4] sm:$0xff] %vm23_vm0, %v85_v47 }
 0x112   :  { %v72_v49 = vsel %vm71_vm7, %v101_v36, %v68_v48 }
 0x113   :  { %v74_v50 = vmul.f32 %v72_v49, %v40_v22 }
 0x115   :  { %v80_v51 = vmul.f32 %v94_v39, %v74_v50 }
 0x117   :  { %v86_v52 = vadd.f32 %v95_v42, %v80_v51 }
 0x119   :  { %88 = vst.msk [vmem:[%s162_s4 + $0x8] sm:$0xff] %vm23_vm0, %v86_v52 }

// kernel: _lambda_.34
= control target key start
LH: loop header
LB: loop body
LE: loop exit
PB: predicated region body
PF: predicated region fallthrough
CT: control target
= control target key end

     0   :  { %vm27_vm0 = vcmask 261120   ;;  %s95_s1 = inlined_call_operand.vmem [shape: f32[32,128], index: 1, kind: input, shape index: {}]   ;;  %s96_s0 = inlined_call_operand.vmem [shape: f32[2,32], index: 0, kind: input, shape index: {}]   ;;  %s97_s2 = inlined_call_operand.vmem [shape: f32[1,128], index: 2, kind: input, shape index: {}]   ;;  %s98_s3 = inlined_call_operand.vmem [shape: f32[2,128], index: 3, kind: output, shape index: {}]  }
   0x1   :  { %v19_v0 = vld [vmem:[%s95_s1 + $0x10] sm:$0xff]  ;;  %v20_v1 = vld [vmem:[%s95_s1 + $0x18] sm:$0xff]  ;;  %v17_v2 = vld [vmem:[%s95_s1] sm:$0xff] }
   0x2   :  { %v22_v3 = vpack.c.bf16 %v20_v1, %v19_v0  ;;  %v18_v4 = vld [vmem:[%s95_s1 + $0x8] sm:$0xff]  ;;  %v15_v6 = vld [vmem:[%s96_s0] sm:$0x3] }
   0x3   :  { %v21_v5 = vpack.c.bf16 %v18_v4, %v17_v2  ;;  %v16_v7 = vpack.c.bf16 %v15_v6, %v15_v6  ;;  %v51_v8 = vld [vmem:[%s97_s2] ss:$0 sm:$0xff] }
   0x4   :  { %37 = vmatpush.bf16.msra.mxu0 %v22_v3 }
   0x8   :  { %38 = vmatpush.bf16.msra.mxu0 %v21_v5 }
   0xb   :  { %50 = vmatmul.msk.bf16.vlgmr.msra.gmra.mxu0 %vm27_vm0, %v16_v7 }
  0x88   :  { %v40_v9 = vpop.f32.mrf.mxu0 }
  0x89   :  { %v41_v10 = vadd.f32 %v51_v8, %v40_v9 }
  0x8b   :  { %52 = vtanh.f32 %v41_v10 }
  0x90   :  { %v42_v11 = vpop.f32.mrf.mxu0 }
  0x91   :  { %v53_v12 = vpop.eup %52 }
  0x92   :  { %45 = vst [vmem:[%s98_s3] sm:$0x3] %v53_v12 }

// kernel: _lambda_.24
= control target key start
LH: loop header
LB: loop body
LE: loop exit
PB: predicated region body
PF: predicated region fallthrough
CT: control target
= control target key end

     0   :  { %vm28_vm0 = vcmask 261120   ;;  %s123_s1 = inlined_call_operand.vmem [shape: f32[32,128], index: 1, kind: input, shape index: {}]   ;;  %s124_s0 = inlined_call_operand.vmem [shape: f32[16,32], index: 0, kind: input, shape index: {}]   ;;  %s125_s2 = inlined_call_operand.vmem [shape: f32[1,128], index: 2, kind: input, shape index: {}]   ;;  %s126_s3 = inlined_call_operand.vmem [shape: f32[16,128], index: 3, kind: output, shape index: {}]  }
   0x1   :  { %v20_v0 = vld [vmem:[%s123_s1 + $0x10] sm:$0xff]  ;;  %v21_v1 = vld [vmem:[%s123_s1 + $0x18] sm:$0xff]  ;;  %v18_v2 = vld [vmem:[%s123_s1] sm:$0xff] }
   0x2   :  { %v23_v3 = vpack.c.bf16 %v21_v1, %v20_v0  ;;  %v19_v4 = vld [vmem:[%s123_s1 + $0x8] sm:$0xff]  ;;  %v15_v6 = vld [vmem:[%s124_s0] sm:$0xff] }
   0x3   :  { %v22_v5 = vpack.c.bf16 %v19_v4, %v18_v2  ;;  %v16_v7 = vld [vmem:[%s124_s0 + $0x8] sm:$0xff]  ;;  %v71_v9 = vld [vmem:[%s125_s2] ss:$0 sm:$0xff] }
   0x4   :  { %38 = vmatpush.bf16.msra.mxu0 %v23_v3  ;;  %v17_v8 = vpack.c.bf16 %v16_v7, %v15_v6 }
   0x8   :  { %39 = vmatpush.bf16.msra.mxu0 %v22_v5 }
   0xb   :  { %70 = vmatmul.msk.bf16.vlgmr.msra.gmra.mxu0 %vm28_vm0, %v17_v8 }
  0x88   :  { %v41_v10 = vpop.f32.mrf.mxu0 }
  0x89   :  { %v42_v11 = vadd.f32 %v71_v9, %v41_v10 }
  0x8b   :  { %v48_v12 = vmul.f32 0.044715, %v42_v11  ;;  %v46_v25 = vmul.f32 0.5, %v42_v11 }
  0x8d   :  { %v50_v13 = vmul.f32 %v48_v12, %v42_v11 }
  0x8f   :  { %v52_v14 = vmul.f32 %v50_v13, %v42_v11 }
  0x90   :  { %v43_v15 = vpop.f32.mrf.mxu0 }
  0x91   :  { %v54_v16 = vadd.f32 %v52_v14, %v42_v11  ;;  %v44_v17 = vadd.f32 %v71_v9, %v43_v15 }
  0x93   :  { %v56_v18 = vmul.f32 0.7978846, %v54_v16  ;;  %v49_v19 = vmul.f32 0.044715, %v44_v17  ;;  %v47_v29 = vmul.f32 0.5, %v44_v17 }
  0x95   :  { %72 = vtanh.f32 %v56_v18  ;;  %v51_v20 = vmul.f32 %v49_v19, %v44_v17 }
  0x97   :  { %v53_v21 = vmul.f32 %v51_v20, %v44_v17 }
  0x99   :  { %v55_v22 = vadd.f32 %v53_v21, %v44_v17 }
  0x9b   :  { %v73_v23 = vpop.eup %72  ;;  %v57_v24 = vmul.f32 0.7978846, %v55_v22 }
  0x9c   :  { %v60_v26 = vadd.f32 1.0, %v73_v23 }
  0x9d   :  { %74 = vtanh.f32 %v57_v24 }
  0x9e   :  { %v62_v27 = vmul.f32 %v60_v26, %v46_v25 }
  0xa0   :  { %64 = vst [vmem:[%s126_s3] sm:$0xff] %v62_v27 }
  0xa3   :  { %v75_v28 = vpop.eup %74 }
  0xa4   :  { %v61_v30 = vadd.f32 1.0, %v75_v28 }
  0xa6   :  { %v63_v31 = vmul.f32 %v61_v30, %v47_v29 }
  0xa8   :  { %65 = vst [vmem:[%s126_s3 + $0x8] sm:$0xff] %v63_v31 }

// kernel: _lambda_.35
= control target key start
LH: loop header
LB: loop body
LE: loop exit
PB: predicated region body
PF: predicated region fallthrough
CT: control target
= control target key end

     0   :  { %vm27_vm0 = vcmask 261120   ;;  %s92_s1 = inlined_call_operand.vmem [shape: f32[32,128], index: 1, kind: input, shape index: {}]   ;;  %s93_s0 = inlined_call_operand.vmem [shape: f32[2,32], index: 0, kind: input, shape index: {}]   ;;  %s94_s2 = inlined_call_operand.vmem [shape: f32[1,128], index: 2, kind: input, shape index: {}]   ;;  %s95_s3 = inlined_call_operand.vmem [shape: f32[2,128], index: 3, kind: output, shape index: {}]  }
   0x1   :  { %v19_v0 = vld [vmem:[%s92_s1 + $0x10] sm:$0xff]  ;;  %v20_v1 = vld [vmem:[%s92_s1 + $0x18] sm:$0xff]  ;;  %v17_v2 = vld [vmem:[%s92_s1] sm:$0xff] }
   0x2   :  { %v22_v3 = vpack.c.bf16 %v20_v1, %v19_v0  ;;  %v18_v4 = vld [vmem:[%s92_s1 + $0x8] sm:$0xff]  ;;  %v15_v6 = vld [vmem:[%s93_s0] sm:$0x3] }
   0x3   :  { %v21_v5 = vpack.c.bf16 %v18_v4, %v17_v2  ;;  %v16_v7 = vpack.c.bf16 %v15_v6, %v15_v6  ;;  %v50_v8 = vld [vmem:[%s94_s2] ss:$0 sm:$0xff] }
   0x4   :  { %37 = vmatpush.bf16.msra.mxu0 %v22_v3 }
   0x8   :  { %38 = vmatpush.bf16.msra.mxu0 %v21_v5 }
   0xb   :  { %49 = vmatmul.msk.bf16.vlgmr.msra.gmra.mxu0 %vm27_vm0, %v16_v7 }
  0x88   :  { %v40_v9 = vpop.f32.mrf.mxu0 }
  0x89   :  { %v41_v10 = vadd.f32 %v50_v8, %v40_v9 }
  0x8b   :  { %44 = vst [vmem:[%s95_s3] sm:$0x3] %v41_v10 }
  0x90   :  { %v42_v11 = vpop.f32.mrf.mxu0 }

// kernel: _lambda_.25
= control target key start
LH: loop header
LB: loop body
LE: loop exit
PB: predicated region body
PF: predicated region fallthrough
CT: control target
= control target key end

     0   :  { %vm34_vm0 = vcmask 523264   ;;  %s119_s1 = inlined_call_operand.vmem [shape: f32[64,128], index: 1, kind: input, shape index: {}]   ;;  %s120_s2 = inlined_call_operand.vmem [shape: f32[1,128], index: 2, kind: input, shape index: {}]   ;;  %s121_s0 = inlined_call_operand.vmem [shape: f32[16,64], index: 0, kind: input, shape index: {}]   ;;  %s122_s3 = inlined_call_operand.vmem [shape: f32[16,128], index: 3, kind: output, shape index: {}]  }
   0x1   :  { %v24_v0 = vld [vmem:[%s119_s1 + $0x30] sm:$0xff]  ;;  %v25_v1 = vld [vmem:[%s119_s1 + $0x38] sm:$0xff]  ;;  %v22_v2 = vld [vmem:[%s119_s1 + $0x20] sm:$0xff] }
   0x2   :  { %v29_v3 = vpack.c.bf16 %v25_v1, %v24_v0  ;;  %v23_v4 = vld [vmem:[%s119_s1 + $0x28] sm:$0xff]  ;;  %v20_v6 = vld [vmem:[%s119_s1 + $0x10] sm:$0xff]  ;;  %v21_v7 = vld [vmem:[%s119_s1 + $0x18] sm:$0xff] }
   0x3   :  { %v28_v5 = vpack.c.bf16 %v23_v4, %v22_v2  ;;  %v27_v8 = vpack.c.bf16 %v21_v7, %v20_v6  ;;  %v18_v9 = vld [vmem:[%s119_s1] sm:$0xff]  ;;  %v19_v10 = vld [vmem:[%s119_s1 + $0x8] sm:$0xff] }
   0x4   :  { %42 = vmatpush.bf16.msra.mxu0 %v29_v3  ;;  %v26_v11 = vpack.c.bf16 %v19_v10, %v18_v9  ;;  %v15_v12 = vld [vmem:[%s121_s0] sm:$0xff]  ;;  %v16_v13 = vld [vmem:[%s121_s0 + $0x8] sm:$0xff] }
   0x5   :  { %v17_v14 = vpack.c.bf16 %v16_v13, %v15_v12  ;;  %v59_v15 = vld [vmem:[%s120_s2] ss:$0 sm:$0xff] }
   0x8   :  { %43 = vmatpush.bf16.msra.mxu0 %v28_v5 }
   0xc   :  { %44 = vmatpush.bf16.msra.mxu0 %v27_v8 }
  0x10   :  { %45 = vmatpush.bf16.msra.mxu0 %v26_v11 }
  0x13   :  { %58 = vmatmul.msk.bf16.vlgmr.msra.gmra.mxu0 %vm34_vm0, %v17_v14 }
  0x90   :  { %v47_v16 = vpop.f32.mrf.mxu0 }
  0x91   :  { %v48_v17 = vadd.f32 %v59_v15, %v47_v16 }
  0x93   :  { %52 = vst [vmem:[%s122_s3] sm:$0xff] %v48_v17 }
  0x98   :  { %v49_v18 = vpop.f32.mrf.mxu0 }
  0x99   :  { %v50_v19 = vadd.f32 %v59_v15, %v49_v18 }
  0x9b   :  { %53 = vst [vmem:[%s122_s3 + $0x8] sm:$0xff] %v50_v19 }

// kernel: _lambda_.37
= control target key start
LH: loop header
LB: loop body
LE: loop exit
PB: predicated region body
PF: predicated region fallthrough
CT: control target
= control target key end

     0   :  { %vm13_vm0 = vcmask 17408   ;;  %s130_s0 = inlined_call_operand.vmem [shape: f32[2,3], index: 0, kind: input, shape index: {}]   ;;  %s131_s1 = inlined_call_operand.vmem [shape: f32[2,3], index: 1, kind: input, shape index: {}]   ;;  %s132_s2 = inlined_call_operand.hbm [shape: f32[1,1], index: 2, kind: output, shape index: {}]  }
   0x1   :  { %v12_v0 = vld [vmem:[%s130_s0] sm:$0x3] }
   0x2   :  { %7 = vsyncpa [#allocation3], 0  ;;  %v14_v1 = vsel %vm13_vm0, %v12_v0, -inf  ;;  %v26_v11 = vld [vmem:[%s131_s1] sm:$0x3]  ;;  %v101_v15 = vmov 2.0  }
   0x3   :  { %15 = vmax.xlane.f32.xlu0 %v14_v1  ;;  %vm33_vm1 = vcmask 1041408   ;;  %s102_s1 = smov [#allocation2]   ;;  %s58_s15 = sshll.u32 %s132_s2, 4  ;;  %vm49_vm3 = vcmask 0   ;;  %s59_s15 = int_to_ptr.hbm [resolvable:$true] %s58_s15 }
   0x4   :  { %s56_s12 = sshll.u32 %s102_s1, 4  ;;  %s57_s12 = int_to_ptr.vmem [resolvable:$true] %s56_s12 }
  0x76   :  { %v16_v2 = vpop.xlane.xlu0 %15 }
  0x77   :  { %v17_v3 = vsub.f32 %v12_v0, %v16_v2 }
  0x79   :  { %v18_v4 = vmul.f32 1.442695, %v17_v3 }
  0x7b   :  { %69 = vpow2.f32 %v18_v4 }
  0x81   :  { %v70_v5 = vpop.eup %69 }
  0x82   :  { %v20_v6 = vsel %vm13_vm0, %v70_v5, 0.0 }
  0x83   :  { %21 = vadd.xlane.f32.xlu0 %v20_v6 }
  0xf6   :  { %v22_v7 = vpop.xlane.xlu0 %21 }
  0xf7   :  { %71 = vlog2.f32 %v22_v7 }
  0xf8   :  { %73 = vrcp.f32 %v101_v15 }
  0xfd   :  { %v72_v8 = vpop.eup %71 }
  0xfe   :  { %v24_v9 = vmul.f32 0.6931472, %v72_v8  ;;  %v74_v16 = vpop.eup %73 }
  0xff   :  { %v42_v17 = vmul.f32 2.0, %v74_v16  ;;  %vm46_vm2 = vweird.f32 %v74_v16 }
 0x100   :  { %v25_v10 = vadd.f32 %v24_v9, %v16_v2 }
 0x101   :  { %v43_v20 = vsub.f32 1.0, %v42_v17 }
 0x102   :  { %v27_v12 = vsub.f32 %v12_v0, %v25_v10 }
 0x103   :  { %v44_v23 = vmul.f32 %v74_v16, %v43_v20 }
 0x104   :  { %v28_v13 = vmul.f32 %v27_v12, %v26_v11 }
 0x105   :  { %v45_v26 = vadd.f32 %v74_v16, %v44_v23 }
 0x106   :  { %v29_v14 = vsel %vm13_vm0, %v28_v13, 0.0 }
 0x107   :  { %30 = vadd.xlane.f32.xlu1 %v29_v14  ;;  %v47_v29 = vsel %vm46_vm2, %v74_v16, %v45_v26 }
 0x17a   :  { %v31_v18 = vpop.xlane.xlu1 %30 }
 0x17b   :  { %v32_v19 = vsub.f32 0.0, %v31_v18 }
 0x17d   :  { %v34_v21 = vsel %vm33_vm1, %v32_v19, 0.0 }
 0x17e   :  { %v35_v22 = vrot.slane %v34_v21, 4 }
 0x180   :  { %v36_v24 = vadd.f32 %v35_v22, %v34_v21 }
 0x182   :  { %v37_v25 = vrot.slane %v36_v24, 2 }
 0x184   :  { %v38_v27 = vadd.f32 %v37_v25, %v36_v24 }
 0x186   :  { %v39_v28 = vrot.slane %v38_v27, 1 }
 0x188   :  { %v40_v30 = vadd.f32 %v39_v28, %v38_v27 }
 0x18a   :  { %v48_v31 = vmul.f32 %v47_v29, %v40_v30 }
 0x18c   :  { %50 = vst.msk [vmem:[#allocation2] sm:$0x1] %vm49_vm3, %v48_v31 }
 0x18d   :  { %61 = dma.vmem_to_hbm [thread:$0]  %s57_s12, 16, %s59_s15, [#allocation3]  }
 0x18e   :  { %99 = dma.done.wait [#allocation3], 16  }
 0x18f   :  { %100 = vsyncadd [#allocation3], 4294967280 }
 0x190   :  { %66 = vsyncpa [#allocation3], 1 }

// kernel: custom-call.20
= control target key start
LH: loop header
LB: loop body
LE: loop exit
PB: predicated region body
PF: predicated region fallthrough
CT: control target
= control target key end

     0   :  { %s6_s0 = inlined_call_operand.vmem [shape: s32[7,2,5], index: 0, kind: output, shape index: {}]  }

// kernel: custom-call.21
= control target key start
LH: loop header
LB: loop body
LE: loop exit
PB: predicated region body
PF: predicated region fallthrough
CT: control target
= control target key end

     0   :  { %s6_s0 = inlined_call_operand.vmem [shape: s32[8,2], index: 0, kind: output, shape index: {}]  }

</bundles_post_ra>
